<compile_context>
chip_gen: v7x
topology: tpu7x:2x2x1
jax: 0.10.0
libtpu: 0.0.40
codegen_flags: <defaults>
</compile_context>

<pallas_src>
import functools

import jax
import jax.numpy as jnp
from jax.experimental import pallas as pl
from jax.experimental.pallas import tpu as pltpu


def _layernorm(h, g, b, eps=1e-5):
    # One-pass stats: var = E[h^2] - mu^2 (two back-to-back XLU reductions instead of a
    # dependent subtract-then-reduce chain).
    mu = jnp.mean(h, axis=-1, keepdims=True)
    ex2 = jnp.mean(h * h, axis=-1, keepdims=True)
    var = ex2 - mu * mu
    return (h - mu) * jax.lax.rsqrt(var + eps) * g + b


def _silu(h):
    return h * jax.nn.sigmoid(h)


def _gelu_tanh(h):
    # TODO(synk): PyTorch nn.GELU() defaults to the exact erf form; tanh approximation
    # is used here -- difference is O(1e-3).
    c = 0.7978845608028654  # sqrt(2/pi)
    return 0.5 * h * (1.0 + jnp.tanh(c * (h + 0.044715 * h * h * h)))


def _ffn_kernel(x_ref, scale_ref, shift_ref,
                w1_ref, b1_ref, w2_ref, b2_ref,
                ln_g_ref, ln_b_ref, wo_ref, bo_ref,
                out_ref, acc_ref, *, bf16_elementwise):
    f = pl.program_id(2)
    n_f = pl.num_programs(2)

    @pl.when(f == 0)
    def _():
        acc_ref[...] = jnp.zeros_like(acc_ref)

    # linear1 (one F-chunk) -> GELU -> partial linear2 accumulation.
    # bf16 operands, f32 MXU accumulation.
    x_bf = x_ref[0].astype(jnp.bfloat16)                                   # (tT, D)
    h1 = jnp.dot(x_bf, w1_ref[...],
                 preferred_element_type=jnp.float32) + b1_ref[...]         # (tT, tF)
    if bf16_elementwise:
        # bf16 GELU on the largest non-MXU tensor (v6e/v7x: halves VPU/EUP pressure and
        # the (tT, tF) footprint; next consumer is a bf16 matmul, so no precision lost).
        h1 = _gelu_tanh(h1.astype(jnp.bfloat16))
    else:
        # v5e path (no bf16 VPU/EUP): keep elementwise math in f32.
        h1 = _gelu_tanh(h1).astype(jnp.bfloat16)
    acc_ref[...] += jnp.dot(h1, w2_ref[...], preferred_element_type=jnp.float32)

    @pl.when(f == n_f - 1)
    def _():
        x = x_ref[0].astype(jnp.float32)
        y = acc_ref[...] + b2_ref[...]                                     # (tT, D)
        # StylizationBlock (scale/shift precomputed in the wrapper; dropout = identity).
        scale = scale_ref[0]
        shift = shift_ref[0]
        h = _layernorm(y, ln_g_ref[...], ln_b_ref[...]) * (1.0 + scale) + shift
        h = _silu(h)
        proj = jnp.dot(h.astype(jnp.bfloat16), wo_ref[...],
                       preferred_element_type=jnp.float32) + bo_ref[...]   # (tT, D)
        out_ref[0] = (x + proj).astype(out_ref.dtype)


def _make_spec(shape, index_map, *, single_buffer):
    """BlockSpec; grid-invariant blocks request a single VMEM buffer when supported."""
    if single_buffer:
        try:
            return pl.BlockSpec(shape, index_map, pipeline_mode=pl.Buffered(1))
        except (TypeError, AttributeError):
            pass
    return pl.BlockSpec(shape, index_map)


def ffn_forward(x, emb, params, *, t_tile=256, f_tile=None, bf16_elementwise=True,
                single_buffer_invariants=True):
    B, T, D = x.shape
    E = emb.shape[-1]
    F = params["w1"].shape[1]

    # StylizationBlock embedding projection hoisted out of the kernel (it is an M=1
    # matmul that would otherwise rerun for every grid step).
    emb_out = _silu(emb.astype(jnp.float32)) @ params["we"].astype(jnp.float32) \
        + params["be"].astype(jnp.float32)                                 # (B, 2D)
    scale = emb_out[:, :D].reshape(B, 1, D).astype(jnp.float32)
    shift = emb_out[:, D:].reshape(B, 1, D).astype(jnp.float32)

    # Matmul weights as bf16 (halves HBM/VMEM traffic); biases / LN params stay f32.
    w1 = params["w1"].astype(jnp.bfloat16)
    w2 = params["w2"].astype(jnp.bfloat16)
    wo = params["wo"].astype(jnp.bfloat16)
    b1, b2 = params["b1"], params["b2"]
    ln_g, ln_b = params["ln_g"], params["ln_b"]
    bo = params["bo"]

    # Tile sizes (tuning knobs).
    #   tT: MXU M dimension -- use multiples of 256 on v6e/v7x, 128 on v5e.
    #   tF: F-reduction chunk (third grid axis); None keeps W1/W2 fully VMEM-resident.
    tT = min(T, t_tile)
    nT = pl.cdiv(T, tT)
    tF = F if f_tile is None else min(F, f_tile)
    assert F % tF == 0, "f_tile must divide ffn_dim (padded F-chunks would read garbage)"
    nF = F // tF
    f_varying = nF > 1  # W1/B1/W2 blocks only vary across the grid when F is tiled.

    # ---- VMEM budget: derive from hardware capacity, leave ~15% headroom for Mosaic.
    try:
        vmem_cap = int(pltpu.get_tpu_info().vmem_capacity_bytes)
    except Exception:
        vmem_cap = 64 * 1024 * 1024  # conservative: v7x per-TC capacity

    def nbytes(shape, dtype):
        n = 1
        for s in shape:
            n *= int(s)
        return n * jnp.dtype(dtype).itemsize

    wbuf = 2 if f_varying else 1
    est = (
        wbuf * (nbytes((D, tF), jnp.bfloat16) + nbytes((tF, D), jnp.bfloat16)
                + nbytes((1, tF), jnp.float32))
        + nbytes((D, D), jnp.bfloat16)                       # wo (invariant, 1 buffer)
        + 4 * nbytes((1, D), jnp.float32)                    # b2, ln_g, ln_b, bo
        + 2 * 2 * nbytes((1, 1, D), jnp.float32)             # scale, shift
        + 2 * 2 * nbytes((1, tT, D), jnp.float32)            # x / out tiles, double-buffered
        + nbytes((tT, D), jnp.float32)                        # accumulator scratch
        + 3 * nbytes((tT, tF), jnp.float32)                   # live (tT, tF) temps
        + 4 * nbytes((tT, D), jnp.float32)                    # finalize temps
    )
    vmem_limit = int(min(0.85 * vmem_cap, max(est, 16 * 1024 * 1024)))

    # ---- Advisory cost estimate for the surrounding XLA schedule.
    flops = int(B * T * (4 * D * F + 2 * D * D))
    transcendentals = int(B * T * (F + 2 * D))
    bytes_accessed = int(
        2 * B * T * D * 4
        + (D * F + F * D + D * D) * 2
        + (F + 4 * D) * 4
        + 2 * B * D * 4)
    cost = pl.CostEstimate(flops=flops, transcendentals=transcendentals,
                           bytes_accessed=bytes_accessed)

    kernel = functools.partial(_ffn_kernel, bf16_elementwise=bf16_elementwise)

    def _call(single_buffer):
        in_specs = [
            pl.BlockSpec((1, tT, D), lambda b, t, f: (b, t, 0)),                    # x
            pl.BlockSpec((1, 1, D), lambda b, t, f: (b, 0, 0)),                     # scale
            pl.BlockSpec((1, 1, D), lambda b, t, f: (b, 0, 0)),                     # shift
            _make_spec((D, tF), lambda b, t, f: (0, f),
                       single_buffer=single_buffer and not f_varying),             # w1 chunk
            _make_spec((1, tF), lambda b, t, f: (0, f),
                       single_buffer=single_buffer and not f_varying),             # b1 chunk
            _make_spec((tF, D), lambda b, t, f: (f, 0),
                       single_buffer=single_buffer and not f_varying),             # w2 chunk
            _make_spec((1, D), lambda b, t, f: (0, 0), single_buffer=single_buffer),  # b2
            _make_spec((1, D), lambda b, t, f: (0, 0), single_buffer=single_buffer),  # ln_g
            _make_spec((1, D), lambda b, t, f: (0, 0), single_buffer=single_buffer),  # ln_b
            _make_spec((D, D), lambda b, t, f: (0, 0), single_buffer=single_buffer),  # wo
            _make_spec((1, D), lambda b, t, f: (0, 0), single_buffer=single_buffer),  # bo
        ]
        return pl.pallas_call(
            kernel,
            out_shape=jax.ShapeDtypeStruct((B, T, D), x.dtype),
            grid=(B, nT, nF),
            in_specs=in_specs,
            out_specs=pl.BlockSpec((1, tT, D), lambda b, t, f: (b, t, 0)),
            scratch_shapes=[pltpu.VMEM((tT, D), jnp.float32)],
            compiler_params=pltpu.CompilerParams(
                dimension_semantics=("parallel", "parallel", "arbitrary"),
                vmem_limit_bytes=vmem_limit),
            cost_estimate=cost,
        )(x, scale, shift, w1, b1, w2, b2, ln_g, ln_b, wo, bo)

    try:
        return _call(single_buffer_invariants)
    except Exception:
        if not single_buffer_invariants:
            raise
        # Fallback for jax versions without pipeline_mode / Buffered(1) lowering support.
        return _call(False)


def init_params(key, D, F, E):
    # NOTE: the PyTorch __init__ zero-inits linear2 and the StylizationBlock's final
    # Linear (zero_module); nonzero deterministic values are used here so the full
    # compute path is exercised.  Forward semantics are unchanged.
    ks = jax.random.split(key, 8)
    s = 0.1
    return dict(
        w1=s * jax.random.normal(ks[0], (D, F), jnp.float32),
        b1=s * jax.random.normal(ks[1], (1, F), jnp.float32),
        w2=s * jax.random.normal(ks[2], (F, D), jnp.float32),
        b2=s * jax.random.normal(ks[3], (1, D), jnp.float32),
        we=s * jax.random.normal(ks[4], (E, 2 * D), jnp.float32),
        be=s * jax.random.normal(ks[5], (1, 2 * D), jnp.float32),
        ln_g=jnp.ones((1, D), jnp.float32),
        ln_b=jnp.zeros((1, D), jnp.float32),
        wo=s * jax.random.normal(ks[6], (D, D), jnp.float32),
        bo=s * jax.random.normal(ks[7], (1, D), jnp.float32),
    )


def reference(x, emb, p):
    """Pure-JAX f32 reference mirroring the PyTorch forward (dropout = identity)."""
    B, T, D = x.shape
    h1 = _gelu_tanh(x @ p["w1"] + p["b1"])
    y = h1 @ p["w2"] + p["b2"]
    emb_out = _silu(emb) @ p["we"] + p["be"]           # (B, 2D)
    scale = emb_out[:, None, :D]
    shift = emb_out[:, None, D:]
    h = _layernorm(y, p["ln_g"], p["ln_b"]) * (1.0 + scale) + shift
    h = _silu(h) @ p["wo"] + p["bo"]
    return x + h


if __name__ == "__main__":
    key = jax.random.PRNGKey(0)

    def run_case(B, T, D, F, E, **kw):
        kx, ke, kp = jax.random.split(jax.random.fold_in(key, D), 3)
        x = jax.random.normal(kx, (B, T, D), jnp.float32)
        emb = jax.random.normal(ke, (B, E), jnp.float32)
        params = init_params(kp, D, F, E)
        out = jax.block_until_ready(ffn_forward(x, emb, params, **kw))
        ref = reference(x, emb, params)
        max_err = float(jnp.max(jnp.abs(out - ref)))
        # bf16 matmul operands / bf16 GELU (f32 accumulation) vs f32 reference.
        assert jnp.allclose(out, ref, atol=3e-2, rtol=3e-2), max_err

    # Small toy case (module-consistent shapes); weights fully VMEM-resident (nF = 1).
    run_case(B=2, T=8, D=32, F=64, E=32)
    # Exercise the F-reduction (streamed W1/W2 + accumulator) path with 128-aligned chunks.
    run_case(B=2, T=16, D=128, F=256, E=64, f_tile=128)

    print("KERNEL_OK")
</pallas_src>

<mosaic_0001>
module attributes {stable_mosaic.version = 11 : i64} {
  func.func @_ffn_kernel(%arg0: i32, %arg1: i32, %arg2: i32, %arg3: memref<1x8x32xf32, #tpu.memory_space<vmem>>, %arg4: memref<1x1x32xf32, #tpu.memory_space<vmem>>, %arg5: memref<1x1x32xf32, #tpu.memory_space<vmem>>, %arg6: memref<32x64xbf16, #tpu.memory_space<vmem>>, %arg7: memref<1x64xf32, #tpu.memory_space<vmem>>, %arg8: memref<64x32xbf16, #tpu.memory_space<vmem>>, %arg9: memref<1x32xf32, #tpu.memory_space<vmem>>, %arg10: memref<1x32xf32, #tpu.memory_space<vmem>>, %arg11: memref<1x32xf32, #tpu.memory_space<vmem>>, %arg12: memref<32x32xbf16, #tpu.memory_space<vmem>>, %arg13: memref<1x32xf32, #tpu.memory_space<vmem>>, %arg14: memref<1x8x32xf32, #tpu.memory_space<vmem>>, %arg15: memref<8x32xf32, #tpu.memory_space<vmem>>) attributes {dimension_semantics = [#tpu.dimension_semantics<parallel>, #tpu.dimension_semantics<parallel>, #tpu.dimension_semantics<arbitrary>], iteration_bounds = array<i64: 2, 1, 1>, scalar_prefetch = 0 : i64, scratch_operands = 1 : i64, tpu.core_type = #tpu.core_type<tc>, window_params = [{transform_indices = @transform_0, window_bounds = array<i64: 1, 8, 32>}, {transform_indices = @transform_1, window_bounds = array<i64: 1, 1, 32>}, {transform_indices = @transform_2, window_bounds = array<i64: 1, 1, 32>}, {pipeline_mode = #tpu.pipeline_mode<synchronous>, transform_indices = @transform_3, window_bounds = array<i64: 32, 64>}, {pipeline_mode = #tpu.pipeline_mode<synchronous>, transform_indices = @transform_4, window_bounds = array<i64: 1, 64>}, {pipeline_mode = #tpu.pipeline_mode<synchronous>, transform_indices = @transform_5, window_bounds = array<i64: 64, 32>}, {pipeline_mode = #tpu.pipeline_mode<synchronous>, transform_indices = @transform_6, window_bounds = array<i64: 1, 32>}, {pipeline_mode = #tpu.pipeline_mode<synchronous>, transform_indices = @transform_7, window_bounds = array<i64: 1, 32>}, {pipeline_mode = #tpu.pipeline_mode<synchronous>, transform_indices = @transform_8, window_bounds = array<i64: 1, 32>}, {pipeline_mode = #tpu.pipeline_mode<synchronous>, transform_indices = @transform_9, window_bounds = array<i64: 32, 32>}, {pipeline_mode = #tpu.pipeline_mode<synchronous>, transform_indices = @transform_10, window_bounds = array<i64: 1, 32>}, {transform_indices = @transform_11, window_bounds = array<i64: 1, 8, 32>}]} {
    %c0_i32 = arith.constant 0 : i32
    %0 = arith.cmpi eq, %arg2, %c0_i32 : i32
    %1 = arith.extui %0 : i1 to i32
    %c0_i32_0 = arith.constant 0 : i32
    %2 = arith.cmpi ne, %1, %c0_i32_0 : i32
    scf.if %2 {
      %cst_20 = arith.constant 0.000000e+00 : f32
      %33 = vector.broadcast %cst_20 : f32 to vector<8x32xf32>
      %c0_21 = arith.constant 0 : index
      %c0_22 = arith.constant 0 : index
      %34 = vector.load %arg15[%c0_21, %c0_22] : memref<8x32xf32, #tpu.memory_space<vmem>>, vector<8x32xf32>
      tpu.vector_store %arg15[%c0_21, %c0_22], %33 {strides = array<i32>} : memref<8x32xf32, #tpu.memory_space<vmem>>, vector<8x32xf32>,
    } else {
    }
    %c0 = arith.constant 0 : index
    %c0_1 = arith.constant 0 : index
    %c0_2 = arith.constant 0 : index
    %3 = vector.load %arg3[%c0, %c0_1, %c0_2] : memref<1x8x32xf32, #tpu.memory_space<vmem>>, vector<1x8x32xf32>
    %4 = vector.shape_cast %3 : vector<1x8x32xf32> to vector<8x32xf32>
    %5 = arith.truncf %4 : vector<8x32xf32> to vector<8x32xbf16>
    %c0_3 = arith.constant 0 : index
    %c0_4 = arith.constant 0 : index
    %6 = vector.load %arg6[%c0_3, %c0_4] : memref<32x64xbf16, #tpu.memory_space<vmem>>, vector<32x64xbf16>
    %cst = arith.constant dense<0.000000e+00> : vector<8x64xf32>
    %7 = tpu.matmul %5, %6, %cst {dimension_numbers = #tpu.dot_dimension_numbers<[1], [0], [0], [1], [0, 0, 1, 1], [], []>} : vector<8x32xbf16>, vector<32x64xbf16>, vector<8x64xf32> -> vector<8x64xf32>
    %c0_5 = arith.constant 0 : index
    %c0_6 = arith.constant 0 : index
    %8 = vector.load %arg7[%c0_5, %c0_6] : memref<1x64xf32, #tpu.memory_space<vmem>>, vector<1x64xf32>
    %9 = vector.broadcast %8 : vector<1x64xf32> to vector<8x64xf32>
    %10 = arith.addf %7, %9 : vector<8x64xf32>
    %11 = arith.truncf %10 : vector<8x64xf32> to vector<8x64xbf16>
    %cst_7 = arith.constant 5.000000e-01 : bf16
    %12 = vector.broadcast %cst_7 : bf16 to vector<8x64xbf16>
    %13 = arith.mulf %12, %11 : vector<8x64xbf16>
    %cst_8 = arith.constant 4.467770e-02 : bf16
    %14 = vector.broadcast %cst_8 : bf16 to vector<8x64xbf16>
    %15 = arith.mulf %14, %11 : vector<8x64xbf16>
    %16 = arith.mulf %15, %11 : vector<8x64xbf16>
    %17 = arith.mulf %16, %11 : vector<8x64xbf16>
    %18 = arith.addf %11, %17 : vector<8x64xbf16>
    %cst_9 = arith.constant 7.968750e-01 : bf16
    %19 = vector.broadcast %cst_9 : bf16 to vector<8x64xbf16>
    %20 = arith.mulf %19, %18 : vector<8x64xbf16>
    %21 = math.tanh %20 : vector<8x64xbf16>
    %cst_10 = arith.constant 1.000000e+00 : bf16
    %22 = vector.broadcast %cst_10 : bf16 to vector<8x64xbf16>
    %23 = arith.addf %22, %21 : vector<8x64xbf16>
    %24 = arith.mulf %13, %23 : vector<8x64xbf16>
    %c0_11 = arith.constant 0 : index
    %c0_12 = arith.constant 0 : index
    %25 = vector.load %arg15[%c0_11, %c0_12] : memref<8x32xf32, #tpu.memory_space<vmem>>, vector<8x32xf32>
    %c0_13 = arith.constant 0 : index
    %c0_14 = arith.constant 0 : index
    %26 = vector.load %arg8[%c0_13, %c0_14] : memref<64x32xbf16, #tpu.memory_space<vmem>>, vector<64x32xbf16>
    %cst_15 = arith.constant dense<0.000000e+00> : vector<8x32xf32>
    %27 = tpu.matmul %24, %26, %cst_15 {dimension_numbers = #tpu.dot_dimension_numbers<[1], [0], [0], [1], [0, 0, 1, 1], [], []>} : vector<8x64xbf16>, vector<64x32xbf16>, vector<8x32xf32> -> vector<8x32xf32>
    %28 = arith.addf %25, %27 : vector<8x32xf32>
    %c0_16 = arith.constant 0 : index
    %c0_17 = arith.constant 0 : index
    %29 = vector.load %arg15[%c0_16, %c0_17] : memref<8x32xf32, #tpu.memory_space<vmem>>, vector<8x32xf32>
    tpu.vector_store %arg15[%c0_16, %c0_17], %28 {strides = array<i32>} : memref<8x32xf32, #tpu.memory_space<vmem>>, vector<8x32xf32>,
    %c0_i32_18 = arith.constant 0 : i32
    %30 = arith.cmpi eq, %arg2, %c0_i32_18 : i32
    %31 = arith.extui %30 : i1 to i32
    %c0_i32_19 = arith.constant 0 : i32
    %32 = arith.cmpi ne, %31, %c0_i32_19 : i32
    scf.if %32 {
      %c0_20 = arith.constant 0 : index
      %c0_21 = arith.constant 0 : index
      %c0_22 = arith.constant 0 : index
      %33 = vector.load %arg3[%c0_20, %c0_21, %c0_22] : memref<1x8x32xf32, #tpu.memory_space<vmem>>, vector<1x8x32xf32>
      %34 = vector.shape_cast %33 : vector<1x8x32xf32> to vector<8x32xf32>
      %c0_23 = arith.constant 0 : index
      %c0_24 = arith.constant 0 : index
      %35 = vector.load %arg15[%c0_23, %c0_24] : memref<8x32xf32, #tpu.memory_space<vmem>>, vector<8x32xf32>
      %c0_25 = arith.constant 0 : index
      %c0_26 = arith.constant 0 : index
      %36 = vector.load %arg9[%c0_25, %c0_26] : memref<1x32xf32, #tpu.memory_space<vmem>>, vector<1x32xf32>
      %37 = vector.broadcast %36 : vector<1x32xf32> to vector<8x32xf32>
      %38 = arith.addf %35, %37 : vector<8x32xf32>
      %c0_27 = arith.constant 0 : index
      %c0_28 = arith.constant 0 : index
      %c0_29 = arith.constant 0 : index
      %39 = vector.load %arg4[%c0_27, %c0_28, %c0_29] : memref<1x1x32xf32, #tpu.memory_space<vmem>>, vector<1x1x32xf32>
      %40 = vector.shape_cast %39 : vector<1x1x32xf32> to vector<1x32xf32>
      %c0_30 = arith.constant 0 : index
      %c0_31 = arith.constant 0 : index
      %c0_32 = arith.constant 0 : index
      %41 = vector.load %arg5[%c0_30, %c0_31, %c0_32] : memref<1x1x32xf32, #tpu.memory_space<vmem>>, vector<1x1x32xf32>
      %42 = vector.shape_cast %41 : vector<1x1x32xf32> to vector<1x32xf32>
      %c0_33 = arith.constant 0 : index
      %c0_34 = arith.constant 0 : index
      %43 = vector.load %arg10[%c0_33, %c0_34] : memref<1x32xf32, #tpu.memory_space<vmem>>, vector<1x32xf32>
      %c0_35 = arith.constant 0 : index
      %c0_36 = arith.constant 0 : index
      %44 = vector.load %arg11[%c0_35, %c0_36] : memref<1x32xf32, #tpu.memory_space<vmem>>, vector<1x32xf32>
      %cst_37 = arith.constant dense<0.000000e+00> : vector<8xf32>
      %45 = vector.multi_reduction <add>, %38, %cst_37 [1] : vector<8x32xf32> to vector<8xf32>
      %46 = vector.shape_cast %45 : vector<8xf32> to vector<8x1xf32>
      %cst_38 = arith.constant 3.200000e+01 : f32
      %47 = vector.broadcast %cst_38 : f32 to vector<8x1xf32>
      %48 = arith.divf %46, %47 : vector<8x1xf32>
      %49 = arith.mulf %38, %38 : vector<8x32xf32>
      %cst_39 = arith.constant dense<0.000000e+00> : vector<8xf32>
      %50 = vector.multi_reduction <add>, %49, %cst_39 [1] : vector<8x32xf32> to vector<8xf32>
      %51 = vector.shape_cast %50 : vector<8xf32> to vector<8x1xf32>
      %cst_40 = arith.constant 3.200000e+01 : f32
      %52 = vector.broadcast %cst_40 : f32 to vector<8x1xf32>
      %53 = arith.divf %51, %52 : vector<8x1xf32>
      %54 = arith.mulf %48, %48 : vector<8x1xf32>
      %55 = arith.subf %53, %54 : vector<8x1xf32>
      %56 = vector.broadcast %48 : vector<8x1xf32> to vector<8x32xf32>
      %57 = arith.subf %38, %56 : vector<8x32xf32>
      %cst_41 = arith.constant 9.99999974E-6 : f32
      %58 = vector.broadcast %cst_41 : f32 to vector<8x1xf32>
      %59 = arith.addf %55, %58 : vector<8x1xf32>
      %60 = math.rsqrt %59 : vector<8x1xf32>
      %61 = vector.broadcast %60 : vector<8x1xf32> to vector<8x32xf32>
      %62 = arith.mulf %57, %61 : vector<8x32xf32>
      %63 = vector.broadcast %43 : vector<1x32xf32> to vector<8x32xf32>
      %64 = arith.mulf %62, %63 : vector<8x32xf32>
      %65 = vector.broadcast %44 : vector<1x32xf32> to vector<8x32xf32>
      %66 = arith.addf %64, %65 : vector<8x32xf32>
      %cst_42 = arith.constant 1.000000e+00 : f32
      %67 = vector.broadcast %cst_42 : f32 to vector<1x32xf32>
      %68 = arith.addf %67, %40 : vector<1x32xf32>
      %69 = vector.broadcast %68 : vector<1x32xf32> to vector<8x32xf32>
      %70 = arith.mulf %66, %69 : vector<8x32xf32>
      %71 = vector.broadcast %42 : vector<1x32xf32> to vector<8x32xf32>
      %72 = arith.addf %70, %71 : vector<8x32xf32>
      %73 = arith.negf %72 : vector<8x32xf32>
      %74 = math.exp %73 : vector<8x32xf32>
      %cst_43 = arith.constant 1.000000e+00 : f32
      %75 = vector.broadcast %cst_43 : f32 to vector<8x32xf32>
      %76 = arith.addf %75, %74 : vector<8x32xf32>
      %77 = arith.divf %75, %76 : vector<8x32xf32>
      %78 = arith.mulf %72, %77 : vector<8x32xf32>
      %79 = arith.truncf %78 : vector<8x32xf32> to vector<8x32xbf16>
      %c0_44 = arith.constant 0 : index
      %c0_45 = arith.constant 0 : index
      %80 = vector.load %arg12[%c0_44, %c0_45] : memref<32x32xbf16, #tpu.memory_space<vmem>>, vector<32x32xbf16>
      %cst_46 = arith.constant dense<0.000000e+00> : vector<8x32xf32>
      %81 = tpu.matmul %79, %80, %cst_46 {dimension_numbers = #tpu.dot_dimension_numbers<[1], [0], [0], [1], [0, 0, 1, 1], [], []>} : vector<8x32xbf16>, vector<32x32xbf16>, vector<8x32xf32> -> vector<8x32xf32>
      %c0_47 = arith.constant 0 : index
      %c0_48 = arith.constant 0 : index
      %82 = vector.load %arg13[%c0_47, %c0_48] : memref<1x32xf32, #tpu.memory_space<vmem>>, vector<1x32xf32>
      %83 = vector.broadcast %82 : vector<1x32xf32> to vector<8x32xf32>
      %84 = arith.addf %81, %83 : vector<8x32xf32>
      %85 = arith.addf %34, %84 : vector<8x32xf32>
      %c0_49 = arith.constant 0 : index
      %c0_50 = arith.constant 0 : index
      %c0_51 = arith.constant 0 : index
      %86 = vector.load %arg14[%c0_49, %c0_50, %c0_51] : memref<1x8x32xf32, #tpu.memory_space<vmem>>, vector<1x8x32xf32>
      %87 = vector.shape_cast %86 : vector<1x8x32xf32> to vector<8x32xf32>
      %88 = vector.shape_cast %85 : vector<8x32xf32> to vector<1x8x32xf32>
      tpu.vector_store %arg14[%c0_49, %c0_50, %c0_51], %88 {strides = array<i32>} : memref<1x8x32xf32, #tpu.memory_space<vmem>>, vector<1x8x32xf32>,
    } else {
    }
    return
  }
  func.func @transform_0(%arg0: i32, %arg1: i32, %arg2: i32) -> (i32, i32, i32) {
    %c0_i32 = arith.constant 0 : i32
    %c0_i32_0 = arith.constant 0 : i32
    return %arg0, %arg1, %c0_i32 : i32, i32, i32
  }
  func.func @transform_1(%arg0: i32, %arg1: i32, %arg2: i32) -> (i32, i32, i32) {
    %c0_i32 = arith.constant 0 : i32
    %c0_i32_0 = arith.constant 0 : i32
    %c0_i32_1 = arith.constant 0 : i32
    return %arg0, %c0_i32, %c0_i32_0 : i32, i32, i32
  }
  func.func @transform_2(%arg0: i32, %arg1: i32, %arg2: i32) -> (i32, i32, i32) {
    %c0_i32 = arith.constant 0 : i32
    %c0_i32_0 = arith.constant 0 : i32
    %c0_i32_1 = arith.constant 0 : i32
    return %arg0, %c0_i32, %c0_i32_0 : i32, i32, i32
  }
  func.func @transform_3(%arg0: i32, %arg1: i32, %arg2: i32) -> (i32, i32) {
    %c0_i32 = arith.constant 0 : i32
    %c0_i32_0 = arith.constant 0 : i32
    return %c0_i32, %arg2 : i32, i32
  }
  func.func @transform_4(%arg0: i32, %arg1: i32, %arg2: i32) -> (i32, i32) {
    %c0_i32 = arith.constant 0 : i32
    %c0_i32_0 = arith.constant 0 : i32
    return %c0_i32, %arg2 : i32, i32
  }
  func.func @transform_5(%arg0: i32, %arg1: i32, %arg2: i32) -> (i32, i32) {
    %c0_i32 = arith.constant 0 : i32
    %c0_i32_0 = arith.constant 0 : i32
    return %arg2, %c0_i32 : i32, i32
  }
  func.func @transform_6(%arg0: i32, %arg1: i32, %arg2: i32) -> (i32, i32) {
    %c0_i32 = arith.constant 0 : i32
    %c0_i32_0 = arith.constant 0 : i32
    %c0_i32_1 = arith.constant 0 : i32
    return %c0_i32, %c0_i32_0 : i32, i32
  }
  func.func @transform_7(%arg0: i32, %arg1: i32, %arg2: i32) -> (i32, i32) {
    %c0_i32 = arith.constant 0 : i32
    %c0_i32_0 = arith.constant 0 : i32
    %c0_i32_1 = arith.constant 0 : i32
    return %c0_i32, %c0_i32_0 : i32, i32
  }
  func.func @transform_8(%arg0: i32, %arg1: i32, %arg2: i32) -> (i32, i32) {
    %c0_i32 = arith.constant 0 : i32
    %c0_i32_0 = arith.constant 0 : i32
    %c0_i32_1 = arith.constant 0 : i32
    return %c0_i32, %c0_i32_0 : i32, i32
  }
  func.func @transform_9(%arg0: i32, %arg1: i32, %arg2: i32) -> (i32, i32) {
    %c0_i32 = arith.constant 0 : i32
    %c0_i32_0 = arith.constant 0 : i32
    %c0_i32_1 = arith.constant 0 : i32
    return %c0_i32, %c0_i32_0 : i32, i32
  }
  func.func @transform_10(%arg0: i32, %arg1: i32, %arg2: i32) -> (i32, i32) {
    %c0_i32 = arith.constant 0 : i32
    %c0_i32_0 = arith.constant 0 : i32
    %c0_i32_1 = arith.constant 0 : i32
    return %c0_i32, %c0_i32_0 : i32, i32
  }
  func.func @transform_11(%arg0: i32, %arg1: i32, %arg2: i32) -> (i32, i32, i32) {
    %c0_i32 = arith.constant 0 : i32
    %c0_i32_0 = arith.constant 0 : i32
    return %arg0, %arg1, %c0_i32 : i32, i32, i32
  }
}

module attributes {stable_mosaic.version = 11 : i64} {
  func.func @_ffn_kernel(%arg0: i32, %arg1: i32, %arg2: i32, %arg3: memref<1x8x32xf32, #tpu.memory_space<vmem>>, %arg4: memref<1x1x32xf32, #tpu.memory_space<vmem>>, %arg5: memref<1x1x32xf32, #tpu.memory_space<vmem>>, %arg6: memref<32x64xbf16, #tpu.memory_space<vmem>>, %arg7: memref<1x64xf32, #tpu.memory_space<vmem>>, %arg8: memref<64x32xbf16, #tpu.memory_space<vmem>>, %arg9: memref<1x32xf32, #tpu.memory_space<vmem>>, %arg10: memref<1x32xf32, #tpu.memory_space<vmem>>, %arg11: memref<1x32xf32, #tpu.memory_space<vmem>>, %arg12: memref<32x32xbf16, #tpu.memory_space<vmem>>, %arg13: memref<1x32xf32, #tpu.memory_space<vmem>>, %arg14: memref<1x8x32xf32, #tpu.memory_space<vmem>>, %arg15: memref<8x32xf32, #tpu.memory_space<vmem>>) attributes {dimension_semantics = [#tpu.dimension_semantics<parallel>, #tpu.dimension_semantics<parallel>, #tpu.dimension_semantics<arbitrary>], iteration_bounds = array<i64: 2, 1, 1>, scalar_prefetch = 0 : i64, scratch_operands = 1 : i64, tpu.core_type = #tpu.core_type<tc>, window_params = [{transform_indices = @transform_0, window_bounds = array<i64: 1, 8, 32>}, {transform_indices = @transform_1, window_bounds = array<i64: 1, 1, 32>}, {transform_indices = @transform_2, window_bounds = array<i64: 1, 1, 32>}, {transform_indices = @transform_3, window_bounds = array<i64: 32, 64>}, {transform_indices = @transform_4, window_bounds = array<i64: 1, 64>}, {transform_indices = @transform_5, window_bounds = array<i64: 64, 32>}, {pipeline_mode = #tpu.pipeline_mode<synchronous>, transform_indices = @transform_6, window_bounds = array<i64: 1, 32>}, {pipeline_mode = #tpu.pipeline_mode<synchronous>, transform_indices = @transform_7, window_bounds = array<i64: 1, 32>}, {pipeline_mode = #tpu.pipeline_mode<synchronous>, transform_indices = @transform_8, window_bounds = array<i64: 1, 32>}, {pipeline_mode = #tpu.pipeline_mode<synchronous>, transform_indices = @transform_9, window_bounds = array<i64: 32, 32>}, {pipeline_mode = #tpu.pipeline_mode<synchronous>, transform_indices = @transform_10, window_bounds = array<i64: 1, 32>}, {transform_indices = @transform_11, window_bounds = array<i64: 1, 8, 32>}]} {
    %c0_i32 = arith.constant 0 : i32
    %0 = arith.cmpi eq, %arg2, %c0_i32 : i32
    %1 = arith.extui %0 : i1 to i32
    %c0_i32_0 = arith.constant 0 : i32
    %2 = arith.cmpi ne, %1, %c0_i32_0 : i32
    scf.if %2 {
      %cst_20 = arith.constant 0.000000e+00 : f32
      %33 = vector.broadcast %cst_20 : f32 to vector<8x32xf32>
      %c0_21 = arith.constant 0 : index
      %c0_22 = arith.constant 0 : index
      %34 = vector.load %arg15[%c0_21, %c0_22] : memref<8x32xf32, #tpu.memory_space<vmem>>, vector<8x32xf32>
      tpu.vector_store %arg15[%c0_21, %c0_22], %33 {strides = array<i32>} : memref<8x32xf32, #tpu.memory_space<vmem>>, vector<8x32xf32>,
    } else {
    }
    %c0 = arith.constant 0 : index
    %c0_1 = arith.constant 0 : index
    %c0_2 = arith.constant 0 : index
    %3 = vector.load %arg3[%c0, %c0_1, %c0_2] : memref<1x8x32xf32, #tpu.memory_space<vmem>>, vector<1x8x32xf32>
    %4 = vector.shape_cast %3 : vector<1x8x32xf32> to vector<8x32xf32>
    %5 = arith.truncf %4 : vector<8x32xf32> to vector<8x32xbf16>
    %c0_3 = arith.constant 0 : index
    %c0_4 = arith.constant 0 : index
    %6 = vector.load %arg6[%c0_3, %c0_4] : memref<32x64xbf16, #tpu.memory_space<vmem>>, vector<32x64xbf16>
    %cst = arith.constant dense<0.000000e+00> : vector<8x64xf32>
    %7 = tpu.matmul %5, %6, %cst {dimension_numbers = #tpu.dot_dimension_numbers<[1], [0], [0], [1], [0, 0, 1, 1], [], []>} : vector<8x32xbf16>, vector<32x64xbf16>, vector<8x64xf32> -> vector<8x64xf32>
    %c0_5 = arith.constant 0 : index
    %c0_6 = arith.constant 0 : index
    %8 = vector.load %arg7[%c0_5, %c0_6] : memref<1x64xf32, #tpu.memory_space<vmem>>, vector<1x64xf32>
    %9 = vector.broadcast %8 : vector<1x64xf32> to vector<8x64xf32>
    %10 = arith.addf %7, %9 : vector<8x64xf32>
    %11 = arith.truncf %10 : vector<8x64xf32> to vector<8x64xbf16>
    %cst_7 = arith.constant 5.000000e-01 : bf16
    %12 = vector.broadcast %cst_7 : bf16 to vector<8x64xbf16>
    %13 = arith.mulf %12, %11 : vector<8x64xbf16>
    %cst_8 = arith.constant 4.467770e-02 : bf16
    %14 = vector.broadcast %cst_8 : bf16 to vector<8x64xbf16>
    %15 = arith.mulf %14, %11 : vector<8x64xbf16>
    %16 = arith.mulf %15, %11 : vector<8x64xbf16>
    %17 = arith.mulf %16, %11 : vector<8x64xbf16>
    %18 = arith.addf %11, %17 : vector<8x64xbf16>
    %cst_9 = arith.constant 7.968750e-01 : bf16
    %19 = vector.broadcast %cst_9 : bf16 to vector<8x64xbf16>
    %20 = arith.mulf %19, %18 : vector<8x64xbf16>
    %21 = math.tanh %20 : vector<8x64xbf16>
    %cst_10 = arith.constant 1.000000e+00 : bf16
    %22 = vector.broadcast %cst_10 : bf16 to vector<8x64xbf16>
    %23 = arith.addf %22, %21 : vector<8x64xbf16>
    %24 = arith.mulf %13, %23 : vector<8x64xbf16>
    %c0_11 = arith.constant 0 : index
    %c0_12 = arith.constant 0 : index
    %25 = vector.load %arg15[%c0_11, %c0_12] : memref<8x32xf32, #tpu.memory_space<vmem>>, vector<8x32xf32>
    %c0_13 = arith.constant 0 : index
    %c0_14 = arith.constant 0 : index
    %26 = vector.load %arg8[%c0_13, %c0_14] : memref<64x32xbf16, #tpu.memory_space<vmem>>, vector<64x32xbf16>
    %cst_15 = arith.constant dense<0.000000e+00> : vector<8x32xf32>
    %27 = tpu.matmul %24, %26, %cst_15 {dimension_numbers = #tpu.dot_dimension_numbers<[1], [0], [0], [1], [0, 0, 1, 1], [], []>} : vector<8x64xbf16>, vector<64x32xbf16>, vector<8x32xf32> -> vector<8x32xf32>
    %28 = arith.addf %25, %27 : vector<8x32xf32>
    %c0_16 = arith.constant 0 : index
    %c0_17 = arith.constant 0 : index
    %29 = vector.load %arg15[%c0_16, %c0_17] : memref<8x32xf32, #tpu.memory_space<vmem>>, vector<8x32xf32>
    tpu.vector_store %arg15[%c0_16, %c0_17], %28 {strides = array<i32>} : memref<8x32xf32, #tpu.memory_space<vmem>>, vector<8x32xf32>,
    %c0_i32_18 = arith.constant 0 : i32
    %30 = arith.cmpi eq, %arg2, %c0_i32_18 : i32
    %31 = arith.extui %30 : i1 to i32
    %c0_i32_19 = arith.constant 0 : i32
    %32 = arith.cmpi ne, %31, %c0_i32_19 : i32
    scf.if %32 {
      %c0_20 = arith.constant 0 : index
      %c0_21 = arith.constant 0 : index
      %c0_22 = arith.constant 0 : index
      %33 = vector.load %arg3[%c0_20, %c0_21, %c0_22] : memref<1x8x32xf32, #tpu.memory_space<vmem>>, vector<1x8x32xf32>
      %34 = vector.shape_cast %33 : vector<1x8x32xf32> to vector<8x32xf32>
      %c0_23 = arith.constant 0 : index
      %c0_24 = arith.constant 0 : index
      %35 = vector.load %arg15[%c0_23, %c0_24] : memref<8x32xf32, #tpu.memory_space<vmem>>, vector<8x32xf32>
      %c0_25 = arith.constant 0 : index
      %c0_26 = arith.constant 0 : index
      %36 = vector.load %arg9[%c0_25, %c0_26] : memref<1x32xf32, #tpu.memory_space<vmem>>, vector<1x32xf32>
      %37 = vector.broadcast %36 : vector<1x32xf32> to vector<8x32xf32>
      %38 = arith.addf %35, %37 : vector<8x32xf32>
      %c0_27 = arith.constant 0 : index
      %c0_28 = arith.constant 0 : index
      %c0_29 = arith.constant 0 : index
      %39 = vector.load %arg4[%c0_27, %c0_28, %c0_29] : memref<1x1x32xf32, #tpu.memory_space<vmem>>, vector<1x1x32xf32>
      %40 = vector.shape_cast %39 : vector<1x1x32xf32> to vector<1x32xf32>
      %c0_30 = arith.constant 0 : index
      %c0_31 = arith.constant 0 : index
      %c0_32 = arith.constant 0 : index
      %41 = vector.load %arg5[%c0_30, %c0_31, %c0_32] : memref<1x1x32xf32, #tpu.memory_space<vmem>>, vector<1x1x32xf32>
      %42 = vector.shape_cast %41 : vector<1x1x32xf32> to vector<1x32xf32>
      %c0_33 = arith.constant 0 : index
      %c0_34 = arith.constant 0 : index
      %43 = vector.load %arg10[%c0_33, %c0_34] : memref<1x32xf32, #tpu.memory_space<vmem>>, vector<1x32xf32>
      %c0_35 = arith.constant 0 : index
      %c0_36 = arith.constant 0 : index
      %44 = vector.load %arg11[%c0_35, %c0_36] : memref<1x32xf32, #tpu.memory_space<vmem>>, vector<1x32xf32>
      %cst_37 = arith.constant dense<0.000000e+00> : vector<8xf32>
      %45 = vector.multi_reduction <add>, %38, %cst_37 [1] : vector<8x32xf32> to vector<8xf32>
      %46 = vector.shape_cast %45 : vector<8xf32> to vector<8x1xf32>
      %cst_38 = arith.constant 3.200000e+01 : f32
      %47 = vector.broadcast %cst_38 : f32 to vector<8x1xf32>
      %48 = arith.divf %46, %47 : vector<8x1xf32>
      %49 = arith.mulf %38, %38 : vector<8x32xf32>
      %cst_39 = arith.constant dense<0.000000e+00> : vector<8xf32>
      %50 = vector.multi_reduction <add>, %49, %cst_39 [1] : vector<8x32xf32> to vector<8xf32>
      %51 = vector.shape_cast %50 : vector<8xf32> to vector<8x1xf32>
      %cst_40 = arith.constant 3.200000e+01 : f32
      %52 = vector.broadcast %cst_40 : f32 to vector<8x1xf32>
      %53 = arith.divf %51, %52 : vector<8x1xf32>
      %54 = arith.mulf %48, %48 : vector<8x1xf32>
      %55 = arith.subf %53, %54 : vector<8x1xf32>
      %56 = vector.broadcast %48 : vector<8x1xf32> to vector<8x32xf32>
      %57 = arith.subf %38, %56 : vector<8x32xf32>
      %cst_41 = arith.constant 9.99999974E-6 : f32
      %58 = vector.broadcast %cst_41 : f32 to vector<8x1xf32>
      %59 = arith.addf %55, %58 : vector<8x1xf32>
      %60 = math.rsqrt %59 : vector<8x1xf32>
      %61 = vector.broadcast %60 : vector<8x1xf32> to vector<8x32xf32>
      %62 = arith.mulf %57, %61 : vector<8x32xf32>
      %63 = vector.broadcast %43 : vector<1x32xf32> to vector<8x32xf32>
      %64 = arith.mulf %62, %63 : vector<8x32xf32>
      %65 = vector.broadcast %44 : vector<1x32xf32> to vector<8x32xf32>
      %66 = arith.addf %64, %65 : vector<8x32xf32>
      %cst_42 = arith.constant 1.000000e+00 : f32
      %67 = vector.broadcast %cst_42 : f32 to vector<1x32xf32>
      %68 = arith.addf %67, %40 : vector<1x32xf32>
      %69 = vector.broadcast %68 : vector<1x32xf32> to vector<8x32xf32>
      %70 = arith.mulf %66, %69 : vector<8x32xf32>
      %71 = vector.broadcast %42 : vector<1x32xf32> to vector<8x32xf32>
      %72 = arith.addf %70, %71 : vector<8x32xf32>
      %73 = arith.negf %72 : vector<8x32xf32>
      %74 = math.exp %73 : vector<8x32xf32>
      %cst_43 = arith.constant 1.000000e+00 : f32
      %75 = vector.broadcast %cst_43 : f32 to vector<8x32xf32>
      %76 = arith.addf %75, %74 : vector<8x32xf32>
      %77 = arith.divf %75, %76 : vector<8x32xf32>
      %78 = arith.mulf %72, %77 : vector<8x32xf32>
      %79 = arith.truncf %78 : vector<8x32xf32> to vector<8x32xbf16>
      %c0_44 = arith.constant 0 : index
      %c0_45 = arith.constant 0 : index
      %80 = vector.load %arg12[%c0_44, %c0_45] : memref<32x32xbf16, #tpu.memory_space<vmem>>, vector<32x32xbf16>
      %cst_46 = arith.constant dense<0.000000e+00> : vector<8x32xf32>
      %81 = tpu.matmul %79, %80, %cst_46 {dimension_numbers = #tpu.dot_dimension_numbers<[1], [0], [0], [1], [0, 0, 1, 1], [], []>} : vector<8x32xbf16>, vector<32x32xbf16>, vector<8x32xf32> -> vector<8x32xf32>
      %c0_47 = arith.constant 0 : index
      %c0_48 = arith.constant 0 : index
      %82 = vector.load %arg13[%c0_47, %c0_48] : memref<1x32xf32, #tpu.memory_space<vmem>>, vector<1x32xf32>
      %83 = vector.broadcast %82 : vector<1x32xf32> to vector<8x32xf32>
      %84 = arith.addf %81, %83 : vector<8x32xf32>
      %85 = arith.addf %34, %84 : vector<8x32xf32>
      %c0_49 = arith.constant 0 : index
      %c0_50 = arith.constant 0 : index
      %c0_51 = arith.constant 0 : index
      %86 = vector.load %arg14[%c0_49, %c0_50, %c0_51] : memref<1x8x32xf32, #tpu.memory_space<vmem>>, vector<1x8x32xf32>
      %87 = vector.shape_cast %86 : vector<1x8x32xf32> to vector<8x32xf32>
      %88 = vector.shape_cast %85 : vector<8x32xf32> to vector<1x8x32xf32>
      tpu.vector_store %arg14[%c0_49, %c0_50, %c0_51], %88 {strides = array<i32>} : memref<1x8x32xf32, #tpu.memory_space<vmem>>, vector<1x8x32xf32>,
    } else {
    }
    return
  }
  func.func @transform_0(%arg0: i32, %arg1: i32, %arg2: i32) -> (i32, i32, i32) {
    %c0_i32 = arith.constant 0 : i32
    %c0_i32_0 = arith.constant 0 : i32
    return %arg0, %arg1, %c0_i32 : i32, i32, i32
  }
  func.func @transform_1(%arg0: i32, %arg1: i32, %arg2: i32) -> (i32, i32, i32) {
    %c0_i32 = arith.constant 0 : i32
    %c0_i32_0 = arith.constant 0 : i32
    %c0_i32_1 = arith.constant 0 : i32
    return %arg0, %c0_i32, %c0_i32_0 : i32, i32, i32
  }
  func.func @transform_2(%arg0: i32, %arg1: i32, %arg2: i32) -> (i32, i32, i32) {
    %c0_i32 = arith.constant 0 : i32
    %c0_i32_0 = arith.constant 0 : i32
    %c0_i32_1 = arith.constant 0 : i32
    return %arg0, %c0_i32, %c0_i32_0 : i32, i32, i32
  }
  func.func @transform_3(%arg0: i32, %arg1: i32, %arg2: i32) -> (i32, i32) {
    %c0_i32 = arith.constant 0 : i32
    %c0_i32_0 = arith.constant 0 : i32
    return %c0_i32, %arg2 : i32, i32
  }
  func.func @transform_4(%arg0: i32, %arg1: i32, %arg2: i32) -> (i32, i32) {
    %c0_i32 = arith.constant 0 : i32
    %c0_i32_0 = arith.constant 0 : i32
    return %c0_i32, %arg2 : i32, i32
  }
  func.func @transform_5(%arg0: i32, %arg1: i32, %arg2: i32) -> (i32, i32) {
    %c0_i32 = arith.constant 0 : i32
    %c0_i32_0 = arith.constant 0 : i32
    return %arg2, %c0_i32 : i32, i32
  }
  func.func @transform_6(%arg0: i32, %arg1: i32, %arg2: i32) -> (i32, i32) {
    %c0_i32 = arith.constant 0 : i32
    %c0_i32_0 = arith.constant 0 : i32
    %c0_i32_1 = arith.constant 0 : i32
    return %c0_i32, %c0_i32_0 : i32, i32
  }
  func.func @transform_7(%arg0: i32, %arg1: i32, %arg2: i32) -> (i32, i32) {
    %c0_i32 = arith.constant 0 : i32
    %c0_i32_0 = arith.constant 0 : i32
    %c0_i32_1 = arith.constant 0 : i32
    return %c0_i32, %c0_i32_0 : i32, i32
  }
  func.func @transform_8(%arg0: i32, %arg1: i32, %arg2: i32) -> (i32, i32) {
    %c0_i32 = arith.constant 0 : i32
    %c0_i32_0 = arith.constant 0 : i32
    %c0_i32_1 = arith.constant 0 : i32
    return %c0_i32, %c0_i32_0 : i32, i32
  }
  func.func @transform_9(%arg0: i32, %arg1: i32, %arg2: i32) -> (i32, i32) {
    %c0_i32 = arith.constant 0 : i32
    %c0_i32_0 = arith.constant 0 : i32
    %c0_i32_1 = arith.constant 0 : i32
    return %c0_i32, %c0_i32_0 : i32, i32
  }
  func.func @transform_10(%arg0: i32, %arg1: i32, %arg2: i32) -> (i32, i32) {
    %c0_i32 = arith.constant 0 : i32
    %c0_i32_0 = arith.constant 0 : i32
    %c0_i32_1 = arith.constant 0 : i32
    return %c0_i32, %c0_i32_0 : i32, i32
  }
  func.func @transform_11(%arg0: i32, %arg1: i32, %arg2: i32) -> (i32, i32, i32) {
    %c0_i32 = arith.constant 0 : i32
    %c0_i32_0 = arith.constant 0 : i32
    return %arg0, %arg1, %c0_i32 : i32, i32, i32
  }
}

</mosaic_0001>

<bundles_post_ra>
// kernel: tpu_custom_call.1
= control target key start
LH: loop header
LB: loop body
LE: loop exit
PB: predicated region body
PF: predicated region fallthrough
CT: control target
= control target key end

     0   :  { %s1657_s0 = inlined_call_operand.vmem [shape: f32[2,8,32], index: 0, kind: input, shape index: {}]   ;;  %s1658_s1 = inlined_call_operand.vmem [shape: f32[2,1,32], index: 1, kind: input, shape index: {}]   ;;  %s1659_s2 = inlined_call_operand.hbm [shape: f32[2,1,32], index: 2, kind: input, shape index: {}]   ;;  %s1660_s3 = inlined_call_operand.vmem [shape: bf16[32,64], index: 3, kind: input, shape index: {}]   ;;  %s1661_s4 = inlined_call_operand.hbm [shape: f32[1,64], index: 4, kind: input, shape index: {}]   ;;  %s1662_s5 = inlined_call_operand.vmem [shape: bf16[64,32], index: 5, kind: input, shape index: {}]   ;;  %s1663_s6 = inlined_call_operand.vmem [shape: f32[1,32], index: 6, kind: input, shape index: {}]   ;;  %s1664_s7 = inlined_call_operand.vmem [shape: f32[1,32], index: 7, kind: input, shape index: {}]   ;;  %s1665_s8 = inlined_call_operand.vmem [shape: f32[1,32], index: 8, kind: input, shape index: {}]   ;;  %s1666_s9 = inlined_call_operand.vmem [shape: bf16[32,32], index: 9, kind: input, shape index: {}]   ;;  %s1667_s10 = inlined_call_operand.vmem [shape: f32[1,32], index: 10, kind: input, shape index: {}]   ;;  %s1668_s11 = inlined_call_operand.hbm [shape: f32[2,8,32], index: 11, kind: output, shape index: {}]  }
   0x1   :  { %1676 = sst [smem:[#allocation14_spill]] %s1661_s4 }
   0x2   :  { %1677 = sst [smem:[#allocation15_spill]] %s1667_s10 }
   0x3   :  { %1678 = sst [smem:[#allocation16_spill]] %s1668_s11 }
   0x4   :  { %16 = vsyncpa [#allocation4], 0 }
   0x5   :  { %18 = vsyncpa [#allocation4 + $0x1], 0 }
   0x6   :  { %19 = vsyncpa [#allocation7], 0 }
   0x7   :  { %20 = vsyncpa [#allocation5], 0 }
   0x8   :  { %22 = vsyncpa [#allocation5 + $0x1], 0  ;;  %s1363_s17 = smov 0   ;;  %s1365_s18 = smov 0  }
   0x9   :  { %s1367_s19 = smov 0   ;;  %s1369_s20 = smov 0  }
   0xa   :  { %s1371_s21 = smov 0   ;;  %s1373_s22 = smov 0  }
   0xb LB: > { %1679 = sst [smem:[#allocation12_spill]] %s1276_s17  ;;  %s988_s23 = sadd.s32 4294967295, %s1296_s22   ;;  %s1296_s22 = sphi %s1373_s22, %s28_s22   ;;  %s1292_s21 = sphi %s1371_s21, %s1707_s21   ;;  %s1288_s20 = sphi %s1369_s20, %s1706_s20   ;;  %s1284_s19 = sphi %s1367_s19, %s1705_s19   ;;  %s1280_s18 = sphi %s1365_s18, %s1704_s18   ;;  %s1276_s17 = sphi %s1363_s17, %s1703_s17  }
   0xc   : > { %s989_s24 = sadd.s32 4294967294, %s1296_s22   ;;  %p121_p0 = scmp.ne.s32.totalorder %s1280_s18, %s1276_s17 }
   0xd   : > { %p1397_p1 = scmp.eq.s32.totalorder %s988_s23, 0  ;;  %p1401_p2 = scmp.eq.s32.totalorder %s988_s23, 1 }
   0xe   : > { %p336_p3 = scmp.eq.s32.totalorder %s989_s24, 1  ;;  %p990_p5 = scmp.ge.s32.totalorder %s1296_s22, 1 }
   0xf   : > { %s1680_s25 = scalar_select %p1397_p1, 1, 0 }
  0x10   : > { %s1681_s26 = scalar_select %p1401_p2, 1, 0 }
  0x11   : > { %p1407_p4 = por %p1397_p1, %p121_p0  ;;  %p1412_p6 = por %p336_p3, %p121_p0 }
  0x12   : > { %p343_p7 = scmp.lt.s32.totalorder %s1296_s22, 3  ;;  %s1298_s30 = smov [#allocation6]  }
  0x13   : > { %s1682_s27 = scalar_select %p1407_p4, 1, 0 }
  0x14   : > { %s1683_s28 = scalar_select %p1412_p6, 1, 0 }
  0x15   : > { %p1417_p8 = pnand %p990_p5, %p343_p7  ;;  %s365_s12 = sshll.u32 %s1298_s30, 4  ;;  %s366_s12 = int_to_ptr.vmem [resolvable:$true] %s365_s12 }
  0x16   : > { %1684 = sst [smem:[#allocation13_spill]] %s1683_s28  ;;  %s47_s14 = sadd.s32 1, %s1292_s21 }
  0x17   : > { %s1685_s29 = scalar_select %p1417_p8, 1, 0 }
  0x18   : > { %p1069_p10 = pneg %p1417_p8  ;;  %p1432_p12 = scmp.ge.s32.totalorder %s47_s14, 2 }
  0x19   : > { %s1688_s4 = sld [smem:[#allocation14_spill]] }
  0x1a   : > { %p1426_p11 = pnand %p1069_p10, %p1397_p1 }
  0x1b   : > { %s1687_s16 = scalar_select %p1432_p12, 1, 0 }
  0x1c   : > { %p1154_p0 = pneg %p1426_p11 }
  0x1f   : > { %s1152_s30 = scalar_lea.hbm %s1688_s4, 16 }
  0x20   : > { %p1153_p13 = scmp.ne.s32.totalorder %s1688_s4, %s1152_s30  ;;  %p1159_p7 = scmp.lt.u32.totalorder %s1152_s30, %s1688_s4 }
  0x22   : > { %p1155_p3 = pnand %p1154_p0, %p1153_p13 }
  0x24   : > { %p1156_p5 = pneg %p1155_p3 }
  0x26   : > { %p1161_p10 = pnand %p1159_p7, %p1156_p5 }
  0x28   : > { %1164 = shalt.err (!%p1161_p10)
}
  0x29   : > { %s1165_s15 = scalar_lea.vmem %s366_s12, 16  ;;  %s1172_s23 = scalar_lea.vmem %s366_s12, 32 }
  0x2a   : > { %p1166_p9 = scmp.ne.s32.totalorder %s366_s12, %s1165_s15  ;;  %p1173_p4 = scmp.lt.s32.totalorder %s366_s12, %s366_s12 }
  0x2b   : > { %p1174_p8 = scmp.lt.s32.totalorder %s1172_s23, %s1165_s15 }
  0x2c   : > { %p1168_p6 = pnand %p1166_p9, %p1154_p0 }
  0x2d   : > { %p1175_p2 = por %p1174_p8, %p1173_p4 }
  0x2e   : > { %p1169_p1 = pneg %p1168_p6 }
  0x30   : > { %p1176_p12 = pnand %p1175_p2, %p1169_p1 }
  0x32   : > { %1179 = shalt.err (!%p1176_p12)
}
  0x33   : > { %1072 = dma.hbm_to_vmem [thread:$0]  (!%p1426_p11), %s1688_s4, 16, %s366_s12, [#allocation7]  }
  0x34   : > { %p1689_p4 = scmp.ne.s32.totalorder %s1687_s16, 0  ;;  %p115_p1 = scmp.ne.s32.totalorder %s1284_s19, %s1280_s18 }
  0x35   : > { %p116_p2 = scmp.eq.s32.totalorder %s1296_s22, 0  ;;  %p1082_p6 = scmp.lt.s32.totalorder %s1296_s22, 2 }
  0x36   : > { %s1709_s14 = smov (%p1689_p4, %s47_s14), 0  ;;  %p1690_p12 = scmp.ne.s32.totalorder %s1681_s26, 0 }
  0x37   : > { %s105_s10 = ssub.s32 %s1292_s21, %s1709_s14  ;;  %p117_p9 = por %p116_p2, %p115_p1 }
  0x38   : > { %p106_p8 = scmp.eq.s32.totalorder %s105_s10, 0  ;;  %p1464_p13 = por %p1690_p12, %p115_p1 }
  0x39   : > { %s416_s13 = sand.u32 1, %s1284_s19   ;;  %s1692_s15 = sadd.s32 1, %s1284_s19 }
  0x3a   : > { %s1472_s24 = scalar_select %p106_p8, %s1284_s19, %s1692_s15  }
  0x3b   : > { %s995_s12 = sshll.u32 %s1292_s21, 4  ;;  %s419_s16 = scalar_lea.vmem [#allocation3], %s416_s13 }
  0x3c   : > { %s426_s30 = sshll.u32 %s419_s16, 4  ;;  %s1478_s28 = scalar_lea.hbm %s1659_s2, %s995_s12  ;;  %s1480_s30 = int_to_ptr.vmem [resolvable:$true] %s426_s30 }
  0x3d   : > { %p1482_p11 = pnand %p1082_p6, %p117_p9  ;;  %s417_s10 = scalar_lea.sflag [#allocation4], %s416_s13 }
  0x3e   : > { %s1180_s15 = scalar_lea.hbm %s1478_s28, 16  ;;  %s1185_s23 = scalar_lea.hbm %s1659_s2, 32 }
  0x3f   : > { %p1181_p0 = scmp.ne.s32.totalorder %s1478_s28, %s1180_s15  ;;  %p1182_p3 = pneg %p1482_p11 }
  0x40   : > { %p1186_p10 = scmp.lt.u32.totalorder %s1478_s28, %s1659_s2  ;;  %p1187_p4 = scmp.lt.u32.totalorder %s1185_s23, %s1180_s15 }
  0x41   : > { %p1183_p5 = pnand %p1182_p3, %p1181_p0  ;;  %p1189_p2 = scmp.lt.u32.totalorder %s1180_s15, %s1478_s28 }
  0x42   : > { %p1188_p1 = por %p1187_p4, %p1186_p10 }
  0x43   : > { %p1184_p7 = pneg %p1183_p5 }
  0x44   : > { %p1190_p6 = por %p1189_p2, %p1188_p1 }
  0x46   : > { %p1191_p8 = pnand %p1190_p6, %p1184_p7 }
  0x48   : > { %1194 = shalt.err (!%p1191_p8)
}
  0x49   : > { %s1195_s13 = scalar_lea.vmem %s1480_s30, 16  ;;  %s1299_s12 = smov [#allocation3]  }
  0x4a   : > { %p1196_p9 = scmp.ne.s32.totalorder %s1480_s30, %s1195_s13  ;;  %s1200_s16 = sshll.u32 %s1299_s12, 4  ;;  %s1201_s16 = int_to_ptr.vmem [resolvable:$false] %s1200_s16 }
  0x4b   : > { %s1202_s4 = scalar_lea.vmem %s1201_s16, 32  ;;  %p1203_p5 = scmp.lt.s32.totalorder %s1480_s30, %s1201_s16 }
  0x4c   : > { %p1198_p12 = pnand %p1196_p9, %p1182_p3  ;;  %p1204_p10 = scmp.lt.s32.totalorder %s1202_s4, %s1195_s13 }
  0x4e   : > { %p1199_p0 = pneg %p1198_p12  ;;  %p1205_p4 = por %p1204_p10, %p1203_p5 }
  0x50   : > { %p1206_p1 = pnand %p1205_p4, %p1199_p0 }
  0x52   : > { %1209 = shalt.err (!%p1206_p1)
}
  0x53   : > { %1076 = dma.hbm_to_vmem [thread:$0]  (!%p1482_p11), %s1478_s28, 16, %s1480_s30, %s417_s10  }
  0x54   : > { %p1694_p7 = scmp.ne.s32.totalorder %s1685_s29, 0 }
  0x55   : > { %s1514_s15 = sand.u32 (!%p1694_p7), 1, %s1280_s18   ;;  %p1695_p3 = scmp.ne.s32.totalorder (!%p1694_p7), %s1682_s27, 0 }
  0x56   : > { %435 = sbr.rel (%p1694_p7) target bundleno = 1007 (0x3ef), region = 64  ;;  %s438_s23 = scalar_lea.sflag (!%p1694_p7), [#allocation4], %s1514_s15 }
  0x57   : > { %s440_s17 = scalar_lea.vmem (!%p1694_p7), [#allocation3], %s1514_s15 }
  0x5d   : > { %1263 = dma.done.wait (%p1695_p3), %s438_s23, 16  }
  0x5e   : > { %1265 = vsyncadd (%p1695_p3), %s438_s23, 4294967280  ;;  %p1696_p2 = scmp.ne.s32.totalorder %s1680_s25, 0 }
  0x60   : > { %1267 = dma.done.wait (%p1696_p2), [#allocation7], 16  }
  0x61   : > { %1269 = vsyncadd (%p1696_p2), [#allocation7], 4294967280  ;;  %p501_p11 = scmp.lt.s32.totalorder %s1288_s20, 1  ;;  %vm530_vm0 = vcmask 261120   ;;  %v1300_v0 = vmov 0.0   ;;  %vm1301_vm1 = vmmov 0   ;;  %v739_v46 = vlaneseq }
  0x62   : > { %1033 = vmatprep.subr.bf16.mxu0 %v1300_v0  ;;  %1037 = vmatprep.mubr.msk.bf16.mxu0 %vm1301_vm1, %v1300_v0  ;;  %531 = vst.msk [vmem:[#allocation2] sm:$0xff] %vm530_vm0, %v1300_v0  ;;  %v1136_v1 = vld [vmem:[%s1660_s3] sm:$0xff]   ;;  %v1137_v2 = vld [vmem:[%s1660_s3 + $0x8] sm:$0xff]   ;;  %v1140_v7 = vld [vmem:[%s1662_s5 + $0x10] sm:$0xff]   ;;  %vm644_vm2 = vcmask 523264   ;;  %s1697_s4 = sld [smem:[#allocation15_spill]] }
  0x63   : > { %s1533_s27 = scalar_select %p501_p11, %s1288_s20, 1  ;;  %1041 = vmatprep.subr.bf16.mxu1 %v1300_v0  ;;  %1049 = vmatprep.mubr.msk.bf16.mxu1 %vm1301_vm1, %v1300_v0  ;;  %v1138_v5 = vld [vmem:[%s1662_s5] sm:$0xff]   ;;  %v1139_v6 = vld [vmem:[%s1662_s5 + $0x8] sm:$0xff]   ;;  %v1141_v8 = vld [vmem:[%s1662_s5 + $0x18] sm:$0xff]   ;;  %v740_v47 = vshrl.u32 %v739_v46, 7 }
  0x64   : > { %1034 = vmatpush3.bf16.msra.mxu0 %v1136_v1  ;;  %1042 = vmatpush3.bf16.msra.mxu1 %v1138_v5  ;;  %v1000_v9 = vld [vmem:[#allocation6] ss:$0 sm:$0xff]  ;;  %v1009_v31 = vld [vmem:[%s1663_s6] ss:$0 sm:$0xff]  ;;  %s1302_s13 = smov [#allocation8]  }
  0x65   : > { %s999_s25 = sshll.u32 %s1533_s27, 3  ;;  %1035 = vmatprep.subr.bf16.mxu0 %v1300_v0  ;;  %1043 = vmatprep.subr.bf16.mxu1 %v1300_v0  ;;  %v1142_v37 = vld [vmem:[%s1666_s9] sm:$0xff]   ;;  %v1143_v38 = vld [vmem:[%s1666_s9 + $0x8] sm:$0xff]   ;;  %s510_s30 = scalar_lea.vmem %s1658_s1, %s1533_s27  ;;  %v741_v50 = vsub.s32 0, %v740_v47 }
  0x66   : > { %s507_s28 = scalar_lea.vmem %s1657_s0, %s999_s25  ;;  %v703_v48 = vld [vmem:[%s510_s30] sm:$0x1]  ;;  %s998_s27 = sshll.u32 %s1514_s15, 3 }
  0x67   : > { %v1548_v3 = vld [vmem:[%s507_s28] sm:$0xff]  ;;  %v737_v49 = vadd.f32 1.0, %v703_v48  ;;  %s500_s23 = scalar_lea.vmem [#allocation8], %s998_s27  ;;  %s1698_s28 = sld [smem:[#allocation16_spill]] }
  0x68   : > { %v533_v4 = vpack.c.bf16 %v1548_v3, %v1548_v3  ;;  %1036 = vmatpush3.bf16.msra.mxu0 %v1137_v2  ;;  %1044 = vmatpush3.bf16.msra.mxu1 %v1139_v6  ;;  %v1010_v53 = vld [vmem:[%s1664_s7] ss:$0 sm:$0xff]  ;;  %s843_s25 = sshll.u32 %s500_s23, 4  ;;  %s1214_s27 = sshll.u32 %s1302_s13, 4  ;;  %s1609_s25 = int_to_ptr.vmem [resolvable:$true] %s843_s25  ;;  %s1215_s27 = int_to_ptr.vmem [resolvable:$false] %s1214_s27 }
  0x69   : > { %1053 = vmatprep.subr.bf16.mxu0 %v1300_v0  ;;  %1045 = vmatprep.subr.bf16.mxu1 %v1300_v0  ;;  %v611_v25 = vld [vmem:[#allocation2] sm:$0xff]  ;;  %v742_v56 = vrot.slane %v737_v49, %v741_v50  ;;  %s1210_s10 = scalar_lea.vmem %s1609_s25, 128  ;;  %s1216_s12 = scalar_lea.vmem %s1215_s27, 256 }
  0x6a   : > { %v1011_v55 = vld [vmem:[%s1665_s8] ss:$0 sm:$0xff]  ;;  %p1211_p6 = scmp.ne.s32.totalorder %s1609_s25, %s1210_s10  ;;  %p1217_p12 = scmp.lt.s32.totalorder %s1609_s25, %s1215_s27 }
  0x6b   : > { %1038 = vmatmul.mubr.msk.bf16.vlgmr.msra.gmra.mrb[0].mxu0 %vm530_vm0, %v533_v4  ;;  %v1012_v59 = vld [vmem:[%s440_s17] ss:$0 sm:$0xff]  ;;  %s1019_s17 = sshll.u32 %s1288_s20, 7  ;;  %s829_s20 = scalar_lea.sflag [#allocation5], %s1514_s15 }
  0x6c   : > { %1057 = vmatprep.mubr.msk.bf16.mxu0 %vm1301_vm1, %v1300_v0  ;;  %1046 = vmatpush3.bf16.msra.mxu1 %v1140_v7  ;;  %v1014_v5 = vld [vmem:[%s1697_s4] ss:$0 sm:$0xff]  ;;  %p1212_p8 = pnand %p1211_p6, %p1464_p13  ;;  %p1218_p0 = scmp.lt.s32.totalorder %s1216_s12, %s1210_s10 }
  0x6d   : > { %1047 = vmatprep.subr.bf16.mxu1 %v1300_v0  ;;  %1054 = vmatpush3.bf16.msra.mxu0 %v1142_v37  ;;  %s1607_s26 = scalar_lea.hbm %s1698_s28, %s1019_s17 }
  0x6e   : > { %1055 = vmatprep.subr.bf16.mxu0 %v1300_v0  ;;  %p1213_p9 = pneg %p1212_p8  ;;  %p1219_p5 = por %p1218_p0, %p1217_p12 }
  0x70   : > { %1048 = vmatpush3.bf16.msra.mxu1 %v1141_v8  ;;  %p1220_p10 = pnand %p1219_p5, %p1213_p9 }
  0x71   : > { %1056 = vmatpush3.bf16.msra.mxu0 %v1143_v38 }
 0x13e   : > { %v595_v10 = vpop.f32.mrb[0].mxu0 }
 0x13f   : > { %v596_v11 = vadd.f32 %v1000_v9, %v595_v10  ;;  %v1039_v12 = vpop.f32.mrb[1].mxu0 }
 0x140   : > { %v598_v13 = vpop.f32.mrb[2].mxu0 }
 0x141   : > { %v601_v14 = vpack.c.bf16 %v596_v11, %v596_v11  ;;  %v1040_v15 = vpop.f32.mrb[3].mxu0 }
 0x143   : > { %v603_v16 = vmul.bf16 1027030327, %v601_v14  ;;  %v602_v22 = vmul.bf16 1056980736, %v601_v14 }
 0x145   : > { %v604_v17 = vmul.bf16 %v603_v16, %v601_v14 }
 0x147   : > { %v605_v18 = vmul.bf16 %v604_v17, %v601_v14 }
 0x149   : > { %v606_v19 = vadd.bf16 %v605_v18, %v601_v14 }
 0x14b   : > { %v607_v20 = vmul.bf16 1061961548, %v606_v19 }
 0x14d   : > { %1144 = vtanh.bf16 %v607_v20 }
 0x158   : > { %v1145_v21 = vpop.eup %1144 }
 0x159   : > { %v609_v23 = vadd.bf16 1065369472, %v1145_v21 }
 0x15b   : > { %v610_v24 = vmul.bf16 %v609_v23, %v602_v22 }
 0x15d   : > { %1050 = vmatmul.mubr.msk.bf16.vlgmr.msra.gmra.mrb[0].mxu1 %vm644_vm2, %v610_v24 }
 0x230   : > { %v682_v26 = vpop.f32.mrb[0].mxu1 }
 0x231   : > { %v688_v27 = vadd.f32 %v682_v26, %v611_v25  ;;  %v1051_v28 = vpop.f32.mrb[1].mxu1 }
 0x232   : > { %v685_v29 = vpop.f32.mrb[2].mxu1 }
 0x233   : > { %689 = vst.msk [vmem:[#allocation2] sm:$0xff] %vm530_vm0, %v688_v27  ;;  %v1052_v30 = vpop.f32.mrb[3].mxu1 }
 0x23a   : > { %v694_v32 = vld [vmem:[#allocation2] sm:$0xff] }
 0x23b   : > { %v702_v33 = vadd.f32 %v1009_v31, %v694_v32 }
 0x23d   : > { %v707_v34 = vsel %vm530_vm0, %v702_v33, 0.0  ;;  %v712_v35 = vmul.f32 %v702_v33, %v702_v33 }
 0x23e   : > { %708 = vadd.xlane.f32.xlu0 %v707_v34 }
 0x23f   : > { %v713_v36 = vsel %vm530_vm0, %v712_v35, 0.0 }
 0x242   : > { %714 = vadd.xlane.f32.xlu0 %v713_v36 }
 0x2cb   : > { %v709_v39 = vpop.xlane.xlu0 %708 }
 0x2cc   : > { %v711_v40 = vmul.f32 0.03125, %v709_v39 }
 0x2ce   : > { %v717_v42 = vmul.f32 %v711_v40, %v711_v40  ;;  %v719_v51 = vsub.f32 %v702_v33, %v711_v40 }
 0x2cf   : > { %v715_v41 = vpop.xlane.xlu0 %714 }
 0x2d0   : > { %v716_v43 = vmul.f32 0.03125, %v715_v41 }
 0x2d2   : > { %v718_v44 = vsub.f32 %v716_v43, %v717_v42 }
 0x2d4   : > { %v720_v45 = vadd.f32 1e-05, %v718_v44 }
 0x2d6   : > { %1146 = vrsqrt.f32 %v720_v45 }
 0x2e0   : > { %v1147_v52 = vpop.eup %1146 }
 0x2e1   : > { %v722_v54 = vmul.f32 %v1147_v52, %v719_v51 }
 0x2e3   : > { %v729_v57 = vmul.f32 %v1010_v53, %v722_v54 }
 0x2e5   : > { %v736_v58 = vadd.f32 %v1011_v55, %v729_v57 }
 0x2e7   : > { %v744_v60 = vmul.f32 %v742_v56, %v736_v58 }
 0x2e9   : > { %v751_v61 = vadd.f32 %v1012_v59, %v744_v60 }
 0x2eb   : > { %v1013_v62 = vmul.f32 -1.442695, %v751_v61 }
 0x2ed   : > { %1148 = vpow2.f32 %v1013_v62 }
 0x2f7   : > { %v1149_v63 = vpop.eup %1148 }
 0x2f8   : > { %v755_v0 = vadd.f32 1.0, %v1149_v63 }
 0x2fa   : > { %1150 = vrcp.f32 %v755_v0 }
 0x304   : > { %v1151_v1 = vpop.eup %1150 }
 0x305   : > { %v758_v2 = vmul.f32 %v1151_v1, %v751_v61 }
 0x307   : > { %v759_v4 = vpack.c.bf16 %v758_v2, %v758_v2 }
 0x309   : > { %1058 = vmatmul.mubr.msk.bf16.vlgmr.msra.gmra.mrb[4].mxu0 %vm530_vm0, %v759_v4 }
 0x3dc   : > { %v820_v6 = vpop.f32.mrb[4].mxu0 }
 0x3dd   : > { %v821_v7 = vadd.f32 %v1014_v5, %v820_v6  ;;  %v1059_v8 = vpop.f32.mrb[5].mxu0 }
 0x3de   : > { %v823_v9 = vpop.f32.mrb[6].mxu0 }
 0x3df   : > { %v826_v10 = vadd.f32 %v821_v7, %v1548_v3  ;;  %v1060_v11 = vpop.f32.mrb[7].mxu0 }
 0x3e1   : > { %827 = vst.msk [vmem:[%s500_s23] sm:$0xff] %vm530_vm0, %v826_v10 }
 0x3e2   : > { %1223 = shalt.err (!%p1220_p10)
}
 0x3e3   : > { %s1224_s15 = scalar_lea.hbm %s1607_s26, 128  ;;  %s1228_s17 = scalar_lea.hbm %s1698_s28, 256 }
 0x3e4   : > { %p1225_p4 = scmp.ne.s32.totalorder %s1607_s26, %s1224_s15  ;;  %p1229_p3 = scmp.lt.u32.totalorder %s1607_s26, %s1698_s28 }
 0x3e5   : > { %p1230_p2 = scmp.lt.u32.totalorder %s1228_s17, %s1224_s15  ;;  %p1232_p6 = scmp.lt.u32.totalorder %s1224_s15, %s1607_s26 }
 0x3e6   : > { %p1226_p1 = pnand %p1225_p4, %p1464_p13 }
 0x3e7   : > { %p1231_p11 = por %p1230_p2, %p1229_p3 }
 0x3e8   : > { %p1227_p7 = pneg %p1226_p1 }
 0x3e9   : > { %p1233_p8 = por %p1232_p6, %p1231_p11 }
 0x3eb   : > { %p1234_p9 = pnand %p1233_p8, %p1227_p7 }
 0x3ed   : > { %1237 = shalt.err (!%p1234_p9)
}
 0x3ee   : > { %1067 = dma.vmem_to_hbm [thread:$0]  (%p1464_p13), %s1609_s25, 128, %s1607_s26, %s829_s20  }
 0x3ef PF: > { %s1699_s30 = sld [smem:[#allocation12_spill]]  ;;  %s1700_s10 = sld [smem:[#allocation13_spill]] }
 0x3f0   : > { %p1702_p0 = scmp.ge.s32.totalorder %s1296_s22, 2 }
 0x3f5   : > { %s855_s13 = sand.u32 1, %s1699_s30   ;;  %p1701_p12 = scmp.ne.s32.totalorder %s1700_s10, 0 }
 0x3f6   : > { %s856_s27 = scalar_lea.sflag [#allocation5], %s855_s13 }
 0x3f7   : > { %p1078_p5 = pnand %p1702_p0, %p1701_p12 }
 0x3f9   : > { %1271 = dma.done.wait (!%p1078_p5), %s856_s27, 128  }
 0x3fa   : > { %1273 = vsyncadd (!%p1078_p5), %s856_s27, 4294967168  ;;  %s28_s22 = sadd.s32 1, %s1296_s22   ;;  %s1703_s17 = smov %s1280_s18 }
 0x3fb   : > { %p25_p10 = scmp.ge.s32.totalorder %s28_s22, 4   ;;  %s1704_s18 = smov %s1284_s19 }
 0x3fc   : > { %s1705_s19 = smov %s1472_s24  ;;  %s1706_s20 = smov %s1292_s21 }
 0x3fd   : > { %s1707_s21 = smov %s1709_s14  ;;  %27 = sbr.rel (!%p25_p10) target bundleno = 11 (0xb), region = 134 }
 0x404   :  { %861 = vsyncpa [#allocation4], 1 }
 0x405   :  { %863 = vsyncpa [#allocation4 + $0x1], 1 }
 0x406   :  { %864 = vsyncpa [#allocation7], 1 }
 0x407   :  { %865 = vsyncpa [#allocation5], 1 }
 0x408   :  { %867 = vsyncpa [#allocation5 + $0x1], 1 }

// kernel: tpu_custom_call.1
= control target key start
LH: loop header
LB: loop body
LE: loop exit
PB: predicated region body
PF: predicated region fallthrough
CT: control target
= control target key end

     0   :  { %s1657_s0 = inlined_call_operand.vmem [shape: f32[2,8,32], index: 0, kind: input, shape index: {}]   ;;  %s1658_s1 = inlined_call_operand.vmem [shape: f32[2,1,32], index: 1, kind: input, shape index: {}]   ;;  %s1659_s2 = inlined_call_operand.hbm [shape: f32[2,1,32], index: 2, kind: input, shape index: {}]   ;;  %s1660_s3 = inlined_call_operand.vmem [shape: bf16[32,64], index: 3, kind: input, shape index: {}]   ;;  %s1661_s4 = inlined_call_operand.hbm [shape: f32[1,64], index: 4, kind: input, shape index: {}]   ;;  %s1662_s5 = inlined_call_operand.vmem [shape: bf16[64,32], index: 5, kind: input, shape index: {}]   ;;  %s1663_s6 = inlined_call_operand.vmem [shape: f32[1,32], index: 6, kind: input, shape index: {}]   ;;  %s1664_s7 = inlined_call_operand.vmem [shape: f32[1,32], index: 7, kind: input, shape index: {}]   ;;  %s1665_s8 = inlined_call_operand.vmem [shape: f32[1,32], index: 8, kind: input, shape index: {}]   ;;  %s1666_s9 = inlined_call_operand.vmem [shape: bf16[32,32], index: 9, kind: input, shape index: {}]   ;;  %s1667_s10 = inlined_call_operand.vmem [shape: f32[1,32], index: 10, kind: input, shape index: {}]   ;;  %s1668_s11 = inlined_call_operand.hbm [shape: f32[2,8,32], index: 11, kind: output, shape index: {}]  }
   0x1   :  { %1676 = sst [smem:[#allocation14_spill]] %s1661_s4 }
   0x2   :  { %1677 = sst [smem:[#allocation15_spill]] %s1667_s10 }
   0x3   :  { %1678 = sst [smem:[#allocation16_spill]] %s1668_s11 }
   0x4   :  { %16 = vsyncpa [#allocation4], 0 }
   0x5   :  { %18 = vsyncpa [#allocation4 + $0x1], 0 }
   0x6   :  { %19 = vsyncpa [#allocation7], 0 }
   0x7   :  { %20 = vsyncpa [#allocation5], 0 }
   0x8   :  { %22 = vsyncpa [#allocation5 + $0x1], 0  ;;  %s1363_s17 = smov 0   ;;  %s1365_s18 = smov 0  }
   0x9   :  { %s1367_s19 = smov 0   ;;  %s1369_s20 = smov 0  }
   0xa   :  { %s1371_s21 = smov 0   ;;  %s1373_s22 = smov 0  }
   0xb LB: > { %1679 = sst [smem:[#allocation12_spill]] %s1276_s17  ;;  %s988_s23 = sadd.s32 4294967295, %s1296_s22   ;;  %s1296_s22 = sphi %s1373_s22, %s28_s22   ;;  %s1292_s21 = sphi %s1371_s21, %s1707_s21   ;;  %s1288_s20 = sphi %s1369_s20, %s1706_s20   ;;  %s1284_s19 = sphi %s1367_s19, %s1705_s19   ;;  %s1280_s18 = sphi %s1365_s18, %s1704_s18   ;;  %s1276_s17 = sphi %s1363_s17, %s1703_s17  }
   0xc   : > { %s989_s24 = sadd.s32 4294967294, %s1296_s22   ;;  %p121_p0 = scmp.ne.s32.totalorder %s1280_s18, %s1276_s17 }
   0xd   : > { %p1397_p1 = scmp.eq.s32.totalorder %s988_s23, 0  ;;  %p1401_p2 = scmp.eq.s32.totalorder %s988_s23, 1 }
   0xe   : > { %p336_p3 = scmp.eq.s32.totalorder %s989_s24, 1  ;;  %p990_p5 = scmp.ge.s32.totalorder %s1296_s22, 1 }
   0xf   : > { %s1680_s25 = scalar_select %p1397_p1, 1, 0 }
  0x10   : > { %s1681_s26 = scalar_select %p1401_p2, 1, 0 }
  0x11   : > { %p1407_p4 = por %p1397_p1, %p121_p0  ;;  %p1412_p6 = por %p336_p3, %p121_p0 }
  0x12   : > { %p343_p7 = scmp.lt.s32.totalorder %s1296_s22, 3  ;;  %s1298_s30 = smov [#allocation6]  }
  0x13   : > { %s1682_s27 = scalar_select %p1407_p4, 1, 0 }
  0x14   : > { %s1683_s28 = scalar_select %p1412_p6, 1, 0 }
  0x15   : > { %p1417_p8 = pnand %p990_p5, %p343_p7  ;;  %s365_s12 = sshll.u32 %s1298_s30, 4  ;;  %s366_s12 = int_to_ptr.vmem [resolvable:$true] %s365_s12 }
  0x16   : > { %1684 = sst [smem:[#allocation13_spill]] %s1683_s28  ;;  %s47_s14 = sadd.s32 1, %s1292_s21 }
  0x17   : > { %s1685_s29 = scalar_select %p1417_p8, 1, 0 }
  0x18   : > { %p1069_p10 = pneg %p1417_p8  ;;  %p1432_p12 = scmp.ge.s32.totalorder %s47_s14, 2 }
  0x19   : > { %s1688_s4 = sld [smem:[#allocation14_spill]] }
  0x1a   : > { %p1426_p11 = pnand %p1069_p10, %p1397_p1 }
  0x1b   : > { %s1687_s16 = scalar_select %p1432_p12, 1, 0 }
  0x1c   : > { %p1154_p0 = pneg %p1426_p11 }
  0x1f   : > { %s1152_s30 = scalar_lea.hbm %s1688_s4, 16 }
  0x20   : > { %p1153_p13 = scmp.ne.s32.totalorder %s1688_s4, %s1152_s30  ;;  %p1159_p7 = scmp.lt.u32.totalorder %s1152_s30, %s1688_s4 }
  0x22   : > { %p1155_p3 = pnand %p1154_p0, %p1153_p13 }
  0x24   : > { %p1156_p5 = pneg %p1155_p3 }
  0x26   : > { %p1161_p10 = pnand %p1159_p7, %p1156_p5 }
  0x28   : > { %1164 = shalt.err (!%p1161_p10)
}
  0x29   : > { %s1165_s15 = scalar_lea.vmem %s366_s12, 16  ;;  %s1172_s23 = scalar_lea.vmem %s366_s12, 32 }
  0x2a   : > { %p1166_p9 = scmp.ne.s32.totalorder %s366_s12, %s1165_s15  ;;  %p1173_p4 = scmp.lt.s32.totalorder %s366_s12, %s366_s12 }
  0x2b   : > { %p1174_p8 = scmp.lt.s32.totalorder %s1172_s23, %s1165_s15 }
  0x2c   : > { %p1168_p6 = pnand %p1166_p9, %p1154_p0 }
  0x2d   : > { %p1175_p2 = por %p1174_p8, %p1173_p4 }
  0x2e   : > { %p1169_p1 = pneg %p1168_p6 }
  0x30   : > { %p1176_p12 = pnand %p1175_p2, %p1169_p1 }
  0x32   : > { %1179 = shalt.err (!%p1176_p12)
}
  0x33   : > { %1072 = dma.hbm_to_vmem [thread:$0]  (!%p1426_p11), %s1688_s4, 16, %s366_s12, [#allocation7]  }
  0x34   : > { %p1689_p4 = scmp.ne.s32.totalorder %s1687_s16, 0  ;;  %p115_p1 = scmp.ne.s32.totalorder %s1284_s19, %s1280_s18 }
  0x35   : > { %p116_p2 = scmp.eq.s32.totalorder %s1296_s22, 0  ;;  %p1082_p6 = scmp.lt.s32.totalorder %s1296_s22, 2 }
  0x36   : > { %s1709_s14 = smov (%p1689_p4, %s47_s14), 0  ;;  %p1690_p12 = scmp.ne.s32.totalorder %s1681_s26, 0 }
  0x37   : > { %s105_s10 = ssub.s32 %s1292_s21, %s1709_s14  ;;  %p117_p9 = por %p116_p2, %p115_p1 }
  0x38   : > { %p106_p8 = scmp.eq.s32.totalorder %s105_s10, 0  ;;  %p1464_p13 = por %p1690_p12, %p115_p1 }
  0x39   : > { %s416_s13 = sand.u32 1, %s1284_s19   ;;  %s1692_s15 = sadd.s32 1, %s1284_s19 }
  0x3a   : > { %s1472_s24 = scalar_select %p106_p8, %s1284_s19, %s1692_s15  }
  0x3b   : > { %s995_s12 = sshll.u32 %s1292_s21, 4  ;;  %s419_s16 = scalar_lea.vmem [#allocation3], %s416_s13 }
  0x3c   : > { %s426_s30 = sshll.u32 %s419_s16, 4  ;;  %s1478_s28 = scalar_lea.hbm %s1659_s2, %s995_s12  ;;  %s1480_s30 = int_to_ptr.vmem [resolvable:$true] %s426_s30 }
  0x3d   : > { %p1482_p11 = pnand %p1082_p6, %p117_p9  ;;  %s417_s10 = scalar_lea.sflag [#allocation4], %s416_s13 }
  0x3e   : > { %s1180_s15 = scalar_lea.hbm %s1478_s28, 16  ;;  %s1185_s23 = scalar_lea.hbm %s1659_s2, 32 }
  0x3f   : > { %p1181_p0 = scmp.ne.s32.totalorder %s1478_s28, %s1180_s15  ;;  %p1182_p3 = pneg %p1482_p11 }
  0x40   : > { %p1186_p10 = scmp.lt.u32.totalorder %s1478_s28, %s1659_s2  ;;  %p1187_p4 = scmp.lt.u32.totalorder %s1185_s23, %s1180_s15 }
  0x41   : > { %p1183_p5 = pnand %p1182_p3, %p1181_p0  ;;  %p1189_p2 = scmp.lt.u32.totalorder %s1180_s15, %s1478_s28 }
  0x42   : > { %p1188_p1 = por %p1187_p4, %p1186_p10 }
  0x43   : > { %p1184_p7 = pneg %p1183_p5 }
  0x44   : > { %p1190_p6 = por %p1189_p2, %p1188_p1 }
  0x46   : > { %p1191_p8 = pnand %p1190_p6, %p1184_p7 }
  0x48   : > { %1194 = shalt.err (!%p1191_p8)
}
  0x49   : > { %s1195_s13 = scalar_lea.vmem %s1480_s30, 16  ;;  %s1299_s12 = smov [#allocation3]  }
  0x4a   : > { %p1196_p9 = scmp.ne.s32.totalorder %s1480_s30, %s1195_s13  ;;  %s1200_s16 = sshll.u32 %s1299_s12, 4  ;;  %s1201_s16 = int_to_ptr.vmem [resolvable:$false] %s1200_s16 }
  0x4b   : > { %s1202_s4 = scalar_lea.vmem %s1201_s16, 32  ;;  %p1203_p5 = scmp.lt.s32.totalorder %s1480_s30, %s1201_s16 }
  0x4c   : > { %p1198_p12 = pnand %p1196_p9, %p1182_p3  ;;  %p1204_p10 = scmp.lt.s32.totalorder %s1202_s4, %s1195_s13 }
  0x4e   : > { %p1199_p0 = pneg %p1198_p12  ;;  %p1205_p4 = por %p1204_p10, %p1203_p5 }
  0x50   : > { %p1206_p1 = pnand %p1205_p4, %p1199_p0 }
  0x52   : > { %1209 = shalt.err (!%p1206_p1)
}
  0x53   : > { %1076 = dma.hbm_to_vmem [thread:$0]  (!%p1482_p11), %s1478_s28, 16, %s1480_s30, %s417_s10  }
  0x54   : > { %p1694_p7 = scmp.ne.s32.totalorder %s1685_s29, 0 }
  0x55   : > { %s1514_s15 = sand.u32 (!%p1694_p7), 1, %s1280_s18   ;;  %p1695_p3 = scmp.ne.s32.totalorder (!%p1694_p7), %s1682_s27, 0 }
  0x56   : > { %435 = sbr.rel (%p1694_p7) target bundleno = 1007 (0x3ef), region = 64  ;;  %s438_s23 = scalar_lea.sflag (!%p1694_p7), [#allocation4], %s1514_s15 }
  0x57   : > { %s440_s17 = scalar_lea.vmem (!%p1694_p7), [#allocation3], %s1514_s15 }
  0x5d   : > { %1263 = dma.done.wait (%p1695_p3), %s438_s23, 16  }
  0x5e   : > { %1265 = vsyncadd (%p1695_p3), %s438_s23, 4294967280  ;;  %p1696_p2 = scmp.ne.s32.totalorder %s1680_s25, 0 }
  0x60   : > { %1267 = dma.done.wait (%p1696_p2), [#allocation7], 16  }
  0x61   : > { %1269 = vsyncadd (%p1696_p2), [#allocation7], 4294967280  ;;  %p501_p11 = scmp.lt.s32.totalorder %s1288_s20, 1  ;;  %vm530_vm0 = vcmask 261120   ;;  %v1300_v0 = vmov 0.0   ;;  %vm1301_vm1 = vmmov 0   ;;  %v739_v46 = vlaneseq }
  0x62   : > { %1033 = vmatprep.subr.bf16.mxu0 %v1300_v0  ;;  %1037 = vmatprep.mubr.msk.bf16.mxu0 %vm1301_vm1, %v1300_v0  ;;  %531 = vst.msk [vmem:[#allocation2] sm:$0xff] %vm530_vm0, %v1300_v0  ;;  %v1136_v1 = vld [vmem:[%s1660_s3] sm:$0xff]   ;;  %v1137_v2 = vld [vmem:[%s1660_s3 + $0x8] sm:$0xff]   ;;  %v1140_v7 = vld [vmem:[%s1662_s5 + $0x10] sm:$0xff]   ;;  %vm644_vm2 = vcmask 523264   ;;  %s1697_s4 = sld [smem:[#allocation15_spill]] }
  0x63   : > { %s1533_s27 = scalar_select %p501_p11, %s1288_s20, 1  ;;  %1041 = vmatprep.subr.bf16.mxu1 %v1300_v0  ;;  %1049 = vmatprep.mubr.msk.bf16.mxu1 %vm1301_vm1, %v1300_v0  ;;  %v1138_v5 = vld [vmem:[%s1662_s5] sm:$0xff]   ;;  %v1139_v6 = vld [vmem:[%s1662_s5 + $0x8] sm:$0xff]   ;;  %v1141_v8 = vld [vmem:[%s1662_s5 + $0x18] sm:$0xff]   ;;  %v740_v47 = vshrl.u32 %v739_v46, 7 }
  0x64   : > { %1034 = vmatpush3.bf16.msra.mxu0 %v1136_v1  ;;  %1042 = vmatpush3.bf16.msra.mxu1 %v1138_v5  ;;  %v1000_v9 = vld [vmem:[#allocation6] ss:$0 sm:$0xff]  ;;  %v1009_v31 = vld [vmem:[%s1663_s6] ss:$0 sm:$0xff]  ;;  %s1302_s13 = smov [#allocation8]  }
  0x65   : > { %s999_s25 = sshll.u32 %s1533_s27, 3  ;;  %1035 = vmatprep.subr.bf16.mxu0 %v1300_v0  ;;  %1043 = vmatprep.subr.bf16.mxu1 %v1300_v0  ;;  %v1142_v37 = vld [vmem:[%s1666_s9] sm:$0xff]   ;;  %v1143_v38 = vld [vmem:[%s1666_s9 + $0x8] sm:$0xff]   ;;  %s510_s30 = scalar_lea.vmem %s1658_s1, %s1533_s27  ;;  %v741_v50 = vsub.s32 0, %v740_v47 }
  0x66   : > { %s507_s28 = scalar_lea.vmem %s1657_s0, %s999_s25  ;;  %v703_v48 = vld [vmem:[%s510_s30] sm:$0x1]  ;;  %s998_s27 = sshll.u32 %s1514_s15, 3 }
  0x67   : > { %v1548_v3 = vld [vmem:[%s507_s28] sm:$0xff]  ;;  %v737_v49 = vadd.f32 1.0, %v703_v48  ;;  %s500_s23 = scalar_lea.vmem [#allocation8], %s998_s27  ;;  %s1698_s28 = sld [smem:[#allocation16_spill]] }
  0x68   : > { %v533_v4 = vpack.c.bf16 %v1548_v3, %v1548_v3  ;;  %1036 = vmatpush3.bf16.msra.mxu0 %v1137_v2  ;;  %1044 = vmatpush3.bf16.msra.mxu1 %v1139_v6  ;;  %v1010_v53 = vld [vmem:[%s1664_s7] ss:$0 sm:$0xff]  ;;  %s843_s25 = sshll.u32 %s500_s23, 4  ;;  %s1214_s27 = sshll.u32 %s1302_s13, 4  ;;  %s1609_s25 = int_to_ptr.vmem [resolvable:$true] %s843_s25  ;;  %s1215_s27 = int_to_ptr.vmem [resolvable:$false] %s1214_s27 }
  0x69   : > { %1053 = vmatprep.subr.bf16.mxu0 %v1300_v0  ;;  %1045 = vmatprep.subr.bf16.mxu1 %v1300_v0  ;;  %v611_v25 = vld [vmem:[#allocation2] sm:$0xff]  ;;  %v742_v56 = vrot.slane %v737_v49, %v741_v50  ;;  %s1210_s10 = scalar_lea.vmem %s1609_s25, 128  ;;  %s1216_s12 = scalar_lea.vmem %s1215_s27, 256 }
  0x6a   : > { %v1011_v55 = vld [vmem:[%s1665_s8] ss:$0 sm:$0xff]  ;;  %p1211_p6 = scmp.ne.s32.totalorder %s1609_s25, %s1210_s10  ;;  %p1217_p12 = scmp.lt.s32.totalorder %s1609_s25, %s1215_s27 }
  0x6b   : > { %1038 = vmatmul.mubr.msk.bf16.vlgmr.msra.gmra.mrb[0].mxu0 %vm530_vm0, %v533_v4  ;;  %v1012_v59 = vld [vmem:[%s440_s17] ss:$0 sm:$0xff]  ;;  %s1019_s17 = sshll.u32 %s1288_s20, 7  ;;  %s829_s20 = scalar_lea.sflag [#allocation5], %s1514_s15 }
  0x6c   : > { %1057 = vmatprep.mubr.msk.bf16.mxu0 %vm1301_vm1, %v1300_v0  ;;  %1046 = vmatpush3.bf16.msra.mxu1 %v1140_v7  ;;  %v1014_v5 = vld [vmem:[%s1697_s4] ss:$0 sm:$0xff]  ;;  %p1212_p8 = pnand %p1211_p6, %p1464_p13  ;;  %p1218_p0 = scmp.lt.s32.totalorder %s1216_s12, %s1210_s10 }
  0x6d   : > { %1047 = vmatprep.subr.bf16.mxu1 %v1300_v0  ;;  %1054 = vmatpush3.bf16.msra.mxu0 %v1142_v37  ;;  %s1607_s26 = scalar_lea.hbm %s1698_s28, %s1019_s17 }
  0x6e   : > { %1055 = vmatprep.subr.bf16.mxu0 %v1300_v0  ;;  %p1213_p9 = pneg %p1212_p8  ;;  %p1219_p5 = por %p1218_p0, %p1217_p12 }
  0x70   : > { %1048 = vmatpush3.bf16.msra.mxu1 %v1141_v8  ;;  %p1220_p10 = pnand %p1219_p5, %p1213_p9 }
  0x71   : > { %1056 = vmatpush3.bf16.msra.mxu0 %v1143_v38 }
 0x13e   : > { %v595_v10 = vpop.f32.mrb[0].mxu0 }
 0x13f   : > { %v596_v11 = vadd.f32 %v1000_v9, %v595_v10  ;;  %v1039_v12 = vpop.f32.mrb[1].mxu0 }
 0x140   : > { %v598_v13 = vpop.f32.mrb[2].mxu0 }
 0x141   : > { %v601_v14 = vpack.c.bf16 %v596_v11, %v596_v11  ;;  %v1040_v15 = vpop.f32.mrb[3].mxu0 }
 0x143   : > { %v603_v16 = vmul.bf16 1027030327, %v601_v14  ;;  %v602_v22 = vmul.bf16 1056980736, %v601_v14 }
 0x145   : > { %v604_v17 = vmul.bf16 %v603_v16, %v601_v14 }
 0x147   : > { %v605_v18 = vmul.bf16 %v604_v17, %v601_v14 }
 0x149   : > { %v606_v19 = vadd.bf16 %v605_v18, %v601_v14 }
 0x14b   : > { %v607_v20 = vmul.bf16 1061961548, %v606_v19 }
 0x14d   : > { %1144 = vtanh.bf16 %v607_v20 }
 0x158   : > { %v1145_v21 = vpop.eup %1144 }
 0x159   : > { %v609_v23 = vadd.bf16 1065369472, %v1145_v21 }
 0x15b   : > { %v610_v24 = vmul.bf16 %v609_v23, %v602_v22 }
 0x15d   : > { %1050 = vmatmul.mubr.msk.bf16.vlgmr.msra.gmra.mrb[0].mxu1 %vm644_vm2, %v610_v24 }
 0x230   : > { %v682_v26 = vpop.f32.mrb[0].mxu1 }
 0x231   : > { %v688_v27 = vadd.f32 %v682_v26, %v611_v25  ;;  %v1051_v28 = vpop.f32.mrb[1].mxu1 }
 0x232   : > { %v685_v29 = vpop.f32.mrb[2].mxu1 }
 0x233   : > { %689 = vst.msk [vmem:[#allocation2] sm:$0xff] %vm530_vm0, %v688_v27  ;;  %v1052_v30 = vpop.f32.mrb[3].mxu1 }
 0x23a   : > { %v694_v32 = vld [vmem:[#allocation2] sm:$0xff] }
 0x23b   : > { %v702_v33 = vadd.f32 %v1009_v31, %v694_v32 }
 0x23d   : > { %v707_v34 = vsel %vm530_vm0, %v702_v33, 0.0  ;;  %v712_v35 = vmul.f32 %v702_v33, %v702_v33 }
 0x23e   : > { %708 = vadd.xlane.f32.xlu0 %v707_v34 }
 0x23f   : > { %v713_v36 = vsel %vm530_vm0, %v712_v35, 0.0 }
 0x242   : > { %714 = vadd.xlane.f32.xlu0 %v713_v36 }
 0x2cb   : > { %v709_v39 = vpop.xlane.xlu0 %708 }
 0x2cc   : > { %v711_v40 = vmul.f32 0.03125, %v709_v39 }
 0x2ce   : > { %v717_v42 = vmul.f32 %v711_v40, %v711_v40  ;;  %v719_v51 = vsub.f32 %v702_v33, %v711_v40 }
 0x2cf   : > { %v715_v41 = vpop.xlane.xlu0 %714 }
 0x2d0   : > { %v716_v43 = vmul.f32 0.03125, %v715_v41 }
 0x2d2   : > { %v718_v44 = vsub.f32 %v716_v43, %v717_v42 }
 0x2d4   : > { %v720_v45 = vadd.f32 1e-05, %v718_v44 }
 0x2d6   : > { %1146 = vrsqrt.f32 %v720_v45 }
 0x2e0   : > { %v1147_v52 = vpop.eup %1146 }
 0x2e1   : > { %v722_v54 = vmul.f32 %v1147_v52, %v719_v51 }
 0x2e3   : > { %v729_v57 = vmul.f32 %v1010_v53, %v722_v54 }
 0x2e5   : > { %v736_v58 = vadd.f32 %v1011_v55, %v729_v57 }
 0x2e7   : > { %v744_v60 = vmul.f32 %v742_v56, %v736_v58 }
 0x2e9   : > { %v751_v61 = vadd.f32 %v1012_v59, %v744_v60 }
 0x2eb   : > { %v1013_v62 = vmul.f32 -1.442695, %v751_v61 }
 0x2ed   : > { %1148 = vpow2.f32 %v1013_v62 }
 0x2f7   : > { %v1149_v63 = vpop.eup %1148 }
 0x2f8   : > { %v755_v0 = vadd.f32 1.0, %v1149_v63 }
 0x2fa   : > { %1150 = vrcp.f32 %v755_v0 }
 0x304   : > { %v1151_v1 = vpop.eup %1150 }
 0x305   : > { %v758_v2 = vmul.f32 %v1151_v1, %v751_v61 }
 0x307   : > { %v759_v4 = vpack.c.bf16 %v758_v2, %v758_v2 }
 0x309   : > { %1058 = vmatmul.mubr.msk.bf16.vlgmr.msra.gmra.mrb[4].mxu0 %vm530_vm0, %v759_v4 }
 0x3dc   : > { %v820_v6 = vpop.f32.mrb[4].mxu0 }
 0x3dd   : > { %v821_v7 = vadd.f32 %v1014_v5, %v820_v6  ;;  %v1059_v8 = vpop.f32.mrb[5].mxu0 }
 0x3de   : > { %v823_v9 = vpop.f32.mrb[6].mxu0 }
 0x3df   : > { %v826_v10 = vadd.f32 %v821_v7, %v1548_v3  ;;  %v1060_v11 = vpop.f32.mrb[7].mxu0 }
 0x3e1   : > { %827 = vst.msk [vmem:[%s500_s23] sm:$0xff] %vm530_vm0, %v826_v10 }
 0x3e2   : > { %1223 = shalt.err (!%p1220_p10)
}
 0x3e3   : > { %s1224_s15 = scalar_lea.hbm %s1607_s26, 128  ;;  %s1228_s17 = scalar_lea.hbm %s1698_s28, 256 }
 0x3e4   : > { %p1225_p4 = scmp.ne.s32.totalorder %s1607_s26, %s1224_s15  ;;  %p1229_p3 = scmp.lt.u32.totalorder %s1607_s26, %s1698_s28 }
 0x3e5   : > { %p1230_p2 = scmp.lt.u32.totalorder %s1228_s17, %s1224_s15  ;;  %p1232_p6 = scmp.lt.u32.totalorder %s1224_s15, %s1607_s26 }
 0x3e6   : > { %p1226_p1 = pnand %p1225_p4, %p1464_p13 }
 0x3e7   : > { %p1231_p11 = por %p1230_p2, %p1229_p3 }
 0x3e8   : > { %p1227_p7 = pneg %p1226_p1 }
 0x3e9   : > { %p1233_p8 = por %p1232_p6, %p1231_p11 }
 0x3eb   : > { %p1234_p9 = pnand %p1233_p8, %p1227_p7 }
 0x3ed   : > { %1237 = shalt.err (!%p1234_p9)
}
 0x3ee   : > { %1067 = dma.vmem_to_hbm [thread:$0]  (%p1464_p13), %s1609_s25, 128, %s1607_s26, %s829_s20  }
 0x3ef PF: > { %s1699_s30 = sld [smem:[#allocation12_spill]]  ;;  %s1700_s10 = sld [smem:[#allocation13_spill]] }
 0x3f0   : > { %p1702_p0 = scmp.ge.s32.totalorder %s1296_s22, 2 }
 0x3f5   : > { %s855_s13 = sand.u32 1, %s1699_s30   ;;  %p1701_p12 = scmp.ne.s32.totalorder %s1700_s10, 0 }
 0x3f6   : > { %s856_s27 = scalar_lea.sflag [#allocation5], %s855_s13 }
 0x3f7   : > { %p1078_p5 = pnand %p1702_p0, %p1701_p12 }
 0x3f9   : > { %1271 = dma.done.wait (!%p1078_p5), %s856_s27, 128  }
 0x3fa   : > { %1273 = vsyncadd (!%p1078_p5), %s856_s27, 4294967168  ;;  %s28_s22 = sadd.s32 1, %s1296_s22   ;;  %s1703_s17 = smov %s1280_s18 }
 0x3fb   : > { %p25_p10 = scmp.ge.s32.totalorder %s28_s22, 4   ;;  %s1704_s18 = smov %s1284_s19 }
 0x3fc   : > { %s1705_s19 = smov %s1472_s24  ;;  %s1706_s20 = smov %s1292_s21 }
 0x3fd   : > { %s1707_s21 = smov %s1709_s14  ;;  %27 = sbr.rel (!%p25_p10) target bundleno = 11 (0xb), region = 134 }
 0x404   :  { %861 = vsyncpa [#allocation4], 1 }
 0x405   :  { %863 = vsyncpa [#allocation4 + $0x1], 1 }
 0x406   :  { %864 = vsyncpa [#allocation7], 1 }
 0x407   :  { %865 = vsyncpa [#allocation5], 1 }
 0x408   :  { %867 = vsyncpa [#allocation5 + $0x1], 1 }

</bundles_post_ra>
